<compile_context>
chip_gen: v7x
topology: tpu7x:2x2x1
jax: 0.10.0
libtpu: 0.0.40
codegen_flags: <defaults>
</compile_context>

<pallas_src>
import functools

import jax
import jax.numpy as jnp
from jax.experimental import pallas as pl
from jax.experimental.pallas import tpu as pltpu


# ----------------------------- kernel ---------------------------------------
def _decoder_layer_kernel(
        x_ref, cr_ref,
        wq_ref, bq_ref, wk_ref, bk_ref, wv_ref, bv_ref,
        wo_ref, bo_ref, w1_ref, b1_ref, w2_ref, b2_ref,
        o_ref, *, n_heads):
    """One DecoderLayer applied to a tile of b_tile (batch*n_vars) slices."""
    b_tile, lq, d_model = x_ref.shape
    _, lk, _ = cr_ref.shape
    dk = d_model // n_heads
    rq = b_tile * lq
    rk = b_tile * lk

    # Flatten the batch tile so every projection / MLP matmul has a big M dim.
    x = x_ref[...].reshape(rq, d_model)          # f32 (kept for residual)
    cr = cr_ref[...].reshape(rk, d_model)

    x_bf = x.astype(jnp.bfloat16)
    cr_bf = cr.astype(jnp.bfloat16)

    # ---- Q/K/V projections: bf16 MXU operands, f32 accumulation -------------
    # (wq / bq are pre-scaled by dk**-0.5 on the host.)
    q = jnp.dot(x_bf, wq_ref[...], preferred_element_type=jnp.float32) + bq_ref[...]
    k = jnp.dot(cr_bf, wk_ref[...], preferred_element_type=jnp.float32) + bk_ref[...]
    v = jnp.dot(cr_bf, wv_ref[...], preferred_element_type=jnp.float32) + bv_ref[...]

    q3 = q.reshape(b_tile, lq, d_model)
    k3 = k.reshape(b_tile, lk, d_model)
    v3 = v.reshape(b_tile, lk, d_model)

    # ---- per-head softmax attention, O-projection fused into the loop -------
    attn = jnp.zeros((rq, d_model), jnp.float32)
    for h in range(n_heads):                     # static unroll, n_heads small
        lo = h * dk
        qh = q3[:, :, lo:lo + dk].astype(jnp.bfloat16)   # (b, lq, dk)
        kh = k3[:, :, lo:lo + dk].astype(jnp.bfloat16)   # (b, lk, dk)
        vh = v3[:, :, lo:lo + dk].astype(jnp.bfloat16)
        s = jnp.einsum("bqd,bkd->bqk", qh, kh,
                       preferred_element_type=jnp.float32)
        s = s - jnp.max(s, axis=-1, keepdims=True)
        p = jnp.exp(s)
        p = p * pl.reciprocal(jnp.sum(p, axis=-1, keepdims=True), approx=False)
        ctx = jnp.einsum("bqk,bkd->bqd", p.astype(jnp.bfloat16), vh,
                         preferred_element_type=jnp.float32)     # (b, lq, dk)
        # wo_ref[h] is a free leading-dim slice of the (H, dk, D) weight; the
        # per-head accumulate replaces the lane-axis concat + single O matmul.
        attn = attn + jnp.dot(ctx.reshape(rq, dk).astype(jnp.bfloat16),
                              wo_ref[h], preferred_element_type=jnp.float32)

    # norm1 (folded into wo/bo on the host) + residual with the original x.
    x_cross = attn + bo_ref[...] + x

    # NOTE: the reference layer also computes a causal self-attention on
    # x_cross, but its value never reaches the layer output -> removed.

    # ---- MLP1 -> norm3 (folded into w2/b2) -> residual ----------------------
    hidden = jnp.maximum(
        jnp.dot(x_cross.astype(jnp.bfloat16), w1_ref[...],
                preferred_element_type=jnp.float32) + b1_ref[...], 0.0)
    ff = jnp.dot(hidden.astype(jnp.bfloat16), w2_ref[...],
                 preferred_element_type=jnp.float32) + b2_ref[...]
    out = ff + x_cross                            # (rq, d_model)

    o_ref[...] = out.reshape(b_tile, lq, d_model)


# ----------------------------- host-side helpers ----------------------------
def _tpu_generation():
    try:
        kind = jax.devices()[0].device_kind.lower()
    except Exception:
        return "unknown"
    if "v5 lite" in kind or "v5e" in kind or "v5lite" in kind:
        return "v5e"
    if "v6" in kind:
        return "v6e"
    if "v7" in kind:
        return "v7x"
    return "unknown"


def _choose_b_tile(bn, lq, gen):
    """Pick a batch tile that (a) gives ~256/512 flattened rows per grid step,
    (b) divides bn exactly (no padded copy), (c) leaves >=2 grid steps on v7x
    so the 'parallel' axis shards across both TensorCores."""
    row_target = 512 if gen == "v6e" else 256
    want = max(1, row_target // max(lq, 1))
    if gen == "v7x":
        want = min(want, max(1, bn // 2))
    if want >= bn:
        return bn
    for cand in range(want, 0, -1):               # largest divisor of bn <= want
        if bn % cand == 0:
            return cand
    return bn


def _fold_batchnorm(gamma, beta, running_mean, running_var, eps=1e-5):
    """Eval-mode BatchNorm1d -> per-channel affine (scale, shift)."""
    scale = gamma / jnp.sqrt(running_var + eps)
    shift = beta - running_mean * scale
    return scale.reshape(1, -1), shift.reshape(1, -1)


def _prepare_layer_weights(lp, n_heads):
    """Fold constant affines into the weights and cast matmul weights to bf16."""
    d_model = lp["c_wq"].shape[0]
    dk = d_model // n_heads
    scale = dk ** -0.5
    g1, s1 = _fold_batchnorm(*lp["norm1"])
    g3, s3 = _fold_batchnorm(*lp["norm3"])

    wq = (lp["c_wq"] * scale).astype(jnp.bfloat16)
    bq = lp["c_bq"].reshape(1, -1) * scale
    wk = lp["c_wk"].astype(jnp.bfloat16)
    bk = lp["c_bk"].reshape(1, -1)
    wv = lp["c_wv"].astype(jnp.bfloat16)
    bv = lp["c_bv"].reshape(1, -1)
    # norm1 folded into the output projection; laid out per head (H, dk, D).
    wo = (lp["c_wo"] * g1).reshape(n_heads, dk, d_model).astype(jnp.bfloat16)
    bo = lp["c_bo"].reshape(1, -1) * g1 + s1
    w1 = lp["mlp_w1"].astype(jnp.bfloat16)
    b1 = lp["mlp_b1"].reshape(1, -1)
    # norm3 folded into the second MLP matmul.
    w2 = (lp["mlp_w2"] * g3).astype(jnp.bfloat16)
    b2 = lp["mlp_b2"].reshape(1, -1) * g3 + s3
    return [wq, bq, wk, bk, wv, bv, wo, bo, w1, b1, w2, b2]


def _weight_spec(w):
    """Replicated (constant-index) weight spec; single-buffered to save VMEM."""
    nd = w.ndim
    idx = lambda i, _nd=nd: (0,) * _nd
    try:
        return pl.BlockSpec(w.shape, idx, pipeline_mode=pl.Buffered(1))
    except TypeError:                              # older BlockSpec signature
        return pl.BlockSpec(w.shape, idx)


def decoder_layer_pallas(x_flat, cross_flat, layer_params, n_heads):
    """Apply one DecoderLayer to x_flat (bn, Lq, D) with cross_flat (bn, Lk, D)."""
    x_flat = x_flat.astype(jnp.float32)
    cross_flat = cross_flat.astype(jnp.float32)
    bn, lq, d_model = x_flat.shape
    _, lk, _ = cross_flat.shape
    d_ff = layer_params["mlp_w1"].shape[1]

    weights = _prepare_layer_weights(layer_params, n_heads)

    gen = _tpu_generation()
    b_tile = _choose_b_tile(bn, lq, gen)
    n_steps = bn // b_tile

    in_specs = [
        pl.BlockSpec((b_tile, lq, d_model), lambda i: (i, 0, 0)),
        pl.BlockSpec((b_tile, lk, d_model), lambda i: (i, 0, 0)),
    ] + [_weight_spec(w) for w in weights]
    out_spec = pl.BlockSpec((b_tile, lq, d_model), lambda i: (i, 0, 0))

    weight_bytes = sum(int(w.size) * w.dtype.itemsize for w in weights)
    flops = 2 * bn * (lq * d_model * d_model            # Q projection
                      + 2 * lk * d_model * d_model       # K and V projections
                      + 2 * lq * lk * d_model            # scores + context
                      + lq * d_model * d_model           # output projection
                      + 2 * lq * d_model * d_ff)         # MLP1
    cost = pl.CostEstimate(
        flops=flops,
        transcendentals=bn * n_heads * lq * lk,          # softmax exp
        bytes_accessed=(4 * bn * lq * d_model * 2        # x in + out (f32)
                        + 4 * bn * lk * d_model          # cross in (f32)
                        + weight_bytes))                 # weights resident: once

    # VMEM budget: double-buffered activation blocks + single-buffered weights
    # + intermediates, with headroom; floor above v5e's 16 MiB default scoped
    # limit, cap below v7x's 64 MiB physical VMEM.
    act_bytes = 4 * b_tile * (2 * lq + lk) * d_model
    mid_bytes = 4 * b_tile * lq * max(d_ff, d_model)
    cap = (96 << 20) if gen in ("v5e", "v6e") else (48 << 20)
    vmem_limit = int(min(max(4 * (act_bytes + mid_bytes) + 2 * weight_bytes
                             + (8 << 20), 32 << 20), cap))

    return pl.pallas_call(
        functools.partial(_decoder_layer_kernel, n_heads=n_heads),
        out_shape=jax.ShapeDtypeStruct((bn, lq, d_model), jnp.float32),
        grid=(n_steps,),
        in_specs=in_specs,
        out_specs=out_spec,
        compiler_params=pltpu.CompilerParams(
            dimension_semantics=("parallel",),
            vmem_limit_bytes=vmem_limit),
        cost_estimate=cost,
    )(x_flat, cross_flat, *weights)


def decoder_forward(params, x, cross, output_num_patch, n_heads):
    batch, n_vars, num_patch, d_model = x.shape
    if not params:
        return x
    x_flat = x.reshape(batch * n_vars, num_patch, d_model)
    cross_flat = cross.reshape(batch * n_vars, -1, d_model)
    # The reference Decoder feeds the ORIGINAL x to every layer, so only the
    # LAST layer's output is live; run just that layer.
    out = decoder_layer_pallas(x_flat, cross_flat, params[-1], n_heads)
    return out.reshape(batch, n_vars, num_patch, d_model)


# ----------------------------- parameter init -------------------------------
def _linear_init(key, din, dout):
    kw, kb = jax.random.split(key)
    bound = 1.0 / (din ** 0.5)
    w = jax.random.uniform(kw, (din, dout), jnp.float32, -bound, bound)
    b = jax.random.uniform(kb, (1, dout), jnp.float32, -bound, bound)
    return w, b


def _bn_init(key, d):
    kg, kb = jax.random.split(key)
    gamma = 1.0 + 0.1 * jax.random.normal(kg, (d,), jnp.float32)
    beta = 0.1 * jax.random.normal(kb, (d,), jnp.float32)
    running_mean = jnp.zeros((d,), jnp.float32)    # PyTorch BatchNorm1d defaults
    running_var = jnp.ones((d,), jnp.float32)
    return (gamma, beta, running_mean, running_var)


def init_decoder_params(key, d_layers, d_model, n_heads, d_ff):
    """Full module parameterization (incl. dead self-attn / norm2 branches)."""
    params = []
    for _ in range(d_layers):
        key, *ks = jax.random.split(key, 14)
        lp = {}
        lp["c_wq"], lp["c_bq"] = _linear_init(ks[0], d_model, d_model)
        lp["c_wk"], lp["c_bk"] = _linear_init(ks[1], d_model, d_model)
        lp["c_wv"], lp["c_bv"] = _linear_init(ks[2], d_model, d_model)
        lp["c_wo"], lp["c_bo"] = _linear_init(ks[3], d_model, d_model)
        lp["s_wq"], lp["s_bq"] = _linear_init(ks[4], d_model, d_model)   # dead
        lp["s_wk"], lp["s_bk"] = _linear_init(ks[5], d_model, d_model)   # dead
        lp["s_wv"], lp["s_bv"] = _linear_init(ks[6], d_model, d_model)   # dead
        lp["s_wo"], lp["s_bo"] = _linear_init(ks[7], d_model, d_model)   # dead
        lp["norm1"] = _bn_init(ks[8], d_model)
        lp["norm2"] = _bn_init(ks[9], d_model)                           # dead
        lp["norm3"] = _bn_init(ks[10], d_model)
        lp["mlp_w1"], lp["mlp_b1"] = _linear_init(ks[11], d_model, d_ff)
        lp["mlp_w2"], lp["mlp_b2"] = _linear_init(ks[12], d_ff, d_model)
        params.append(lp)
    return params


if __name__ == "__main__":
    key = jax.random.PRNGKey(0)
    batch, n_vars, num_patch, d_model = 2, 3, 8, 32
    n_heads, d_ff, d_layers = 4, 64, 2
    cross_num_patch = 12

    kx, kc, kp = jax.random.split(key, 3)
    x = jax.random.normal(kx, (batch, n_vars, num_patch, d_model), jnp.float32)
    cross = jax.random.normal(
        kc, (batch, n_vars, cross_num_patch, d_model), jnp.float32)
    params = init_decoder_params(kp, d_layers, d_model, n_heads, d_ff)

    out = decoder_forward(params, x, cross, output_num_patch=num_patch,
                          n_heads=n_heads)
    out = jax.block_until_ready(out)
    assert out.shape == (batch, n_vars, num_patch, d_model)
    assert bool(jnp.all(jnp.isfinite(out)))
    print("KERNEL_OK")
</pallas_src>

<mosaic_0001>
module attributes {stable_mosaic.version = 11 : i64} {
  func.func @_decoder_layer_kernel(%arg0: i32, %arg1: memref<6x8x32xf32, #tpu.memory_space<vmem>>, %arg2: memref<6x12x32xf32, #tpu.memory_space<vmem>>, %arg3: memref<32x32xbf16, #tpu.memory_space<vmem>>, %arg4: memref<1x32xf32, #tpu.memory_space<vmem>>, %arg5: memref<32x32xbf16, #tpu.memory_space<vmem>>, %arg6: memref<1x32xf32, #tpu.memory_space<vmem>>, %arg7: memref<32x32xbf16, #tpu.memory_space<vmem>>, %arg8: memref<1x32xf32, #tpu.memory_space<vmem>>, %arg9: memref<4x8x32xbf16, #tpu.memory_space<vmem>>, %arg10: memref<1x32xf32, #tpu.memory_space<vmem>>, %arg11: memref<32x64xbf16, #tpu.memory_space<vmem>>, %arg12: memref<1x64xf32, #tpu.memory_space<vmem>>, %arg13: memref<64x32xbf16, #tpu.memory_space<vmem>>, %arg14: memref<1x32xf32, #tpu.memory_space<vmem>>, %arg15: memref<6x8x32xf32, #tpu.memory_space<vmem>>) attributes {dimension_semantics = [#tpu.dimension_semantics<parallel>], iteration_bounds = array<i64: 1>, scalar_prefetch = 0 : i64, scratch_operands = 0 : i64, tpu.core_type = #tpu.core_type<tc>, window_params = [{transform_indices = @transform_0, window_bounds = array<i64: 6, 8, 32>}, {transform_indices = @transform_1, window_bounds = array<i64: 6, 12, 32>}, {pipeline_mode = #tpu.pipeline_mode<synchronous>, transform_indices = @transform_2, window_bounds = array<i64: 32, 32>}, {pipeline_mode = #tpu.pipeline_mode<synchronous>, transform_indices = @transform_3, window_bounds = array<i64: 1, 32>}, {pipeline_mode = #tpu.pipeline_mode<synchronous>, transform_indices = @transform_4, window_bounds = array<i64: 32, 32>}, {pipeline_mode = #tpu.pipeline_mode<synchronous>, transform_indices = @transform_5, window_bounds = array<i64: 1, 32>}, {pipeline_mode = #tpu.pipeline_mode<synchronous>, transform_indices = @transform_6, window_bounds = array<i64: 32, 32>}, {pipeline_mode = #tpu.pipeline_mode<synchronous>, transform_indices = @transform_7, window_bounds = array<i64: 1, 32>}, {pipeline_mode = #tpu.pipeline_mode<synchronous>, transform_indices = @transform_8, window_bounds = array<i64: 4, 8, 32>}, {pipeline_mode = #tpu.pipeline_mode<synchronous>, transform_indices = @transform_9, window_bounds = array<i64: 1, 32>}, {pipeline_mode = #tpu.pipeline_mode<synchronous>, transform_indices = @transform_10, window_bounds = array<i64: 32, 64>}, {pipeline_mode = #tpu.pipeline_mode<synchronous>, transform_indices = @transform_11, window_bounds = array<i64: 1, 64>}, {pipeline_mode = #tpu.pipeline_mode<synchronous>, transform_indices = @transform_12, window_bounds = array<i64: 64, 32>}, {pipeline_mode = #tpu.pipeline_mode<synchronous>, transform_indices = @transform_13, window_bounds = array<i64: 1, 32>}, {transform_indices = @transform_14, window_bounds = array<i64: 6, 8, 32>}]} {
    %c0 = arith.constant 0 : index
    %c0_0 = arith.constant 0 : index
    %c0_1 = arith.constant 0 : index
    %0 = vector.load %arg1[%c0, %c0_0, %c0_1] : memref<6x8x32xf32, #tpu.memory_space<vmem>>, vector<6x8x32xf32>
    %1 = vector.shape_cast %0 : vector<6x8x32xf32> to vector<48x32xf32>
    %c0_2 = arith.constant 0 : index
    %c0_3 = arith.constant 0 : index
    %c0_4 = arith.constant 0 : index
    %2 = vector.load %arg2[%c0_2, %c0_3, %c0_4] : memref<6x12x32xf32, #tpu.memory_space<vmem>>, vector<6x12x32xf32>
    %3 = vector.shape_cast %2 : vector<6x12x32xf32> to vector<72x32xf32>
    %4 = arith.truncf %1 : vector<48x32xf32> to vector<48x32xbf16>
    %5 = arith.truncf %3 : vector<72x32xf32> to vector<72x32xbf16>
    %c0_5 = arith.constant 0 : index
    %c0_6 = arith.constant 0 : index
    %6 = vector.load %arg3[%c0_5, %c0_6] : memref<32x32xbf16, #tpu.memory_space<vmem>>, vector<32x32xbf16>
    %cst = arith.constant dense<0.000000e+00> : vector<48x32xf32>
    %7 = tpu.matmul %4, %6, %cst {dimension_numbers = #tpu.dot_dimension_numbers<[1], [0], [0], [1], [0, 0, 1, 1], [], []>} : vector<48x32xbf16>, vector<32x32xbf16>, vector<48x32xf32> -> vector<48x32xf32>
    %c0_7 = arith.constant 0 : index
    %c0_8 = arith.constant 0 : index
    %8 = vector.load %arg4[%c0_7, %c0_8] : memref<1x32xf32, #tpu.memory_space<vmem>>, vector<1x32xf32>
    %9 = vector.broadcast %8 : vector<1x32xf32> to vector<48x32xf32>
    %10 = arith.addf %7, %9 : vector<48x32xf32>
    %c0_9 = arith.constant 0 : index
    %c0_10 = arith.constant 0 : index
    %11 = vector.load %arg5[%c0_9, %c0_10] : memref<32x32xbf16, #tpu.memory_space<vmem>>, vector<32x32xbf16>
    %cst_11 = arith.constant dense<0.000000e+00> : vector<72x32xf32>
    %12 = tpu.matmul %5, %11, %cst_11 {dimension_numbers = #tpu.dot_dimension_numbers<[1], [0], [0], [1], [0, 0, 1, 1], [], []>} : vector<72x32xbf16>, vector<32x32xbf16>, vector<72x32xf32> -> vector<72x32xf32>
    %c0_12 = arith.constant 0 : index
    %c0_13 = arith.constant 0 : index
    %13 = vector.load %arg6[%c0_12, %c0_13] : memref<1x32xf32, #tpu.memory_space<vmem>>, vector<1x32xf32>
    %14 = vector.broadcast %13 : vector<1x32xf32> to vector<72x32xf32>
    %15 = arith.addf %12, %14 : vector<72x32xf32>
    %c0_14 = arith.constant 0 : index
    %c0_15 = arith.constant 0 : index
    %16 = vector.load %arg7[%c0_14, %c0_15] : memref<32x32xbf16, #tpu.memory_space<vmem>>, vector<32x32xbf16>
    %cst_16 = arith.constant dense<0.000000e+00> : vector<72x32xf32>
    %17 = tpu.matmul %5, %16, %cst_16 {dimension_numbers = #tpu.dot_dimension_numbers<[1], [0], [0], [1], [0, 0, 1, 1], [], []>} : vector<72x32xbf16>, vector<32x32xbf16>, vector<72x32xf32> -> vector<72x32xf32>
    %c0_17 = arith.constant 0 : index
    %c0_18 = arith.constant 0 : index
    %18 = vector.load %arg8[%c0_17, %c0_18] : memref<1x32xf32, #tpu.memory_space<vmem>>, vector<1x32xf32>
    %19 = vector.broadcast %18 : vector<1x32xf32> to vector<72x32xf32>
    %20 = arith.addf %17, %19 : vector<72x32xf32>
    %21 = vector.shape_cast %10 : vector<48x32xf32> to vector<6x8x32xf32>
    %22 = vector.shape_cast %15 : vector<72x32xf32> to vector<6x12x32xf32>
    %23 = vector.shape_cast %20 : vector<72x32xf32> to vector<6x12x32xf32>
    %cst_19 = arith.constant 0.000000e+00 : f32
    %24 = vector.broadcast %cst_19 : f32 to vector<48x32xf32>
    %25 = vector.extract_strided_slice %21 {offsets = [0, 0, 0], sizes = [6, 8, 8], strides = [1, 1, 1]} : vector<6x8x32xf32> to vector<6x8x8xf32>
    %26 = arith.truncf %25 : vector<6x8x8xf32> to vector<6x8x8xbf16>
    %27 = vector.extract_strided_slice %22 {offsets = [0, 0, 0], sizes = [6, 12, 8], strides = [1, 1, 1]} : vector<6x12x32xf32> to vector<6x12x8xf32>
    %28 = arith.truncf %27 : vector<6x12x8xf32> to vector<6x12x8xbf16>
    %29 = vector.extract_strided_slice %23 {offsets = [0, 0, 0], sizes = [6, 12, 8], strides = [1, 1, 1]} : vector<6x12x32xf32> to vector<6x12x8xf32>
    %30 = arith.truncf %29 : vector<6x12x8xf32> to vector<6x12x8xbf16>
    "tpu.trace_start"() <{level = 10 : i32, message = "bqd,bkd->bqk"}> : () -> ()
    %cst_20 = arith.constant dense<0.000000e+00> : vector<6x8x12xf32>
    %31 = tpu.matmul %26, %28, %cst_20 {dimension_numbers = #tpu.dot_dimension_numbers<[2], [2], [1], [1], [0, 0, 0, 1, 1, 1], [0], [0]>} : vector<6x8x8xbf16>, vector<6x12x8xbf16>, vector<6x8x12xf32> -> vector<6x8x12xf32>
    "tpu.trace_stop"() : () -> ()
    %cst_21 = arith.constant dense<0xFF800000> : vector<6x8xf32>
    %32 = vector.multi_reduction <maximumf>, %31, %cst_21 [2] : vector<6x8x12xf32> to vector<6x8xf32>
    %33 = vector.shape_cast %32 : vector<6x8xf32> to vector<6x8x1xf32>
    %34 = vector.broadcast %33 : vector<6x8x1xf32> to vector<6x8x12xf32>
    %35 = arith.subf %31, %34 : vector<6x8x12xf32>
    %36 = math.exp %35 : vector<6x8x12xf32>
    %cst_22 = arith.constant dense<0.000000e+00> : vector<6x8xf32>
    %37 = vector.multi_reduction <add>, %36, %cst_22 [2] : vector<6x8x12xf32> to vector<6x8xf32>
    %38 = vector.shape_cast %37 : vector<6x8xf32> to vector<6x8x1xf32>
    %39 = tpu.reciprocal %38 : vector<6x8x1xf32> -> vector<6x8x1xf32>
    %40 = vector.broadcast %39 : vector<6x8x1xf32> to vector<6x8x12xf32>
    %41 = arith.mulf %36, %40 : vector<6x8x12xf32>
    %42 = arith.truncf %41 : vector<6x8x12xf32> to vector<6x8x12xbf16>
    "tpu.trace_start"() <{level = 10 : i32, message = "bqk,bkd->bqd"}> : () -> ()
    %cst_23 = arith.constant dense<0.000000e+00> : vector<6x8x8xf32>
    %43 = tpu.matmul %42, %30, %cst_23 {dimension_numbers = #tpu.dot_dimension_numbers<[2], [1], [1], [2], [0, 0, 0, 1, 1, 2], [0], [0]>} : vector<6x8x12xbf16>, vector<6x12x8xbf16>, vector<6x8x8xf32> -> vector<6x8x8xf32>
    "tpu.trace_stop"() : () -> ()
    %44 = vector.shape_cast %43 : vector<6x8x8xf32> to vector<48x8xf32>
    %45 = arith.truncf %44 : vector<48x8xf32> to vector<48x8xbf16>
    %c0_24 = arith.constant 0 : index
    %c0_25 = arith.constant 0 : index
    %c0_26 = arith.constant 0 : index
    %46 = vector.load %arg9[%c0_24, %c0_25, %c0_26] : memref<4x8x32xbf16, #tpu.memory_space<vmem>>, vector<1x8x32xbf16>
    %47 = vector.shape_cast %46 : vector<1x8x32xbf16> to vector<8x32xbf16>
    %cst_27 = arith.constant dense<0.000000e+00> : vector<48x32xf32>
    %48 = tpu.matmul %45, %47, %cst_27 {dimension_numbers = #tpu.dot_dimension_numbers<[1], [0], [0], [1], [0, 0, 1, 1], [], []>} : vector<48x8xbf16>, vector<8x32xbf16>, vector<48x32xf32> -> vector<48x32xf32>
    %49 = arith.addf %24, %48 : vector<48x32xf32>
    %50 = vector.extract_strided_slice %21 {offsets = [0, 0, 8], sizes = [6, 8, 8], strides = [1, 1, 1]} : vector<6x8x32xf32> to vector<6x8x8xf32>
    %51 = arith.truncf %50 : vector<6x8x8xf32> to vector<6x8x8xbf16>
    %52 = vector.extract_strided_slice %22 {offsets = [0, 0, 8], sizes = [6, 12, 8], strides = [1, 1, 1]} : vector<6x12x32xf32> to vector<6x12x8xf32>
    %53 = arith.truncf %52 : vector<6x12x8xf32> to vector<6x12x8xbf16>
    %54 = vector.extract_strided_slice %23 {offsets = [0, 0, 8], sizes = [6, 12, 8], strides = [1, 1, 1]} : vector<6x12x32xf32> to vector<6x12x8xf32>
    %55 = arith.truncf %54 : vector<6x12x8xf32> to vector<6x12x8xbf16>
    "tpu.trace_start"() <{level = 10 : i32, message = "bqd,bkd->bqk"}> : () -> ()
    %cst_28 = arith.constant dense<0.000000e+00> : vector<6x8x12xf32>
    %56 = tpu.matmul %51, %53, %cst_28 {dimension_numbers = #tpu.dot_dimension_numbers<[2], [2], [1], [1], [0, 0, 0, 1, 1, 1], [0], [0]>} : vector<6x8x8xbf16>, vector<6x12x8xbf16>, vector<6x8x12xf32> -> vector<6x8x12xf32>
    "tpu.trace_stop"() : () -> ()
    %cst_29 = arith.constant dense<0xFF800000> : vector<6x8xf32>
    %57 = vector.multi_reduction <maximumf>, %56, %cst_29 [2] : vector<6x8x12xf32> to vector<6x8xf32>
    %58 = vector.shape_cast %57 : vector<6x8xf32> to vector<6x8x1xf32>
    %59 = vector.broadcast %58 : vector<6x8x1xf32> to vector<6x8x12xf32>
    %60 = arith.subf %56, %59 : vector<6x8x12xf32>
    %61 = math.exp %60 : vector<6x8x12xf32>
    %cst_30 = arith.constant dense<0.000000e+00> : vector<6x8xf32>
    %62 = vector.multi_reduction <add>, %61, %cst_30 [2] : vector<6x8x12xf32> to vector<6x8xf32>
    %63 = vector.shape_cast %62 : vector<6x8xf32> to vector<6x8x1xf32>
    %64 = tpu.reciprocal %63 : vector<6x8x1xf32> -> vector<6x8x1xf32>
    %65 = vector.broadcast %64 : vector<6x8x1xf32> to vector<6x8x12xf32>
    %66 = arith.mulf %61, %65 : vector<6x8x12xf32>
    %67 = arith.truncf %66 : vector<6x8x12xf32> to vector<6x8x12xbf16>
    "tpu.trace_start"() <{level = 10 : i32, message = "bqk,bkd->bqd"}> : () -> ()
    %cst_31 = arith.constant dense<0.000000e+00> : vector<6x8x8xf32>
    %68 = tpu.matmul %67, %55, %cst_31 {dimension_numbers = #tpu.dot_dimension_numbers<[2], [1], [1], [2], [0, 0, 0, 1, 1, 2], [0], [0]>} : vector<6x8x12xbf16>, vector<6x12x8xbf16>, vector<6x8x8xf32> -> vector<6x8x8xf32>
    "tpu.trace_stop"() : () -> ()
    %69 = vector.shape_cast %68 : vector<6x8x8xf32> to vector<48x8xf32>
    %70 = arith.truncf %69 : vector<48x8xf32> to vector<48x8xbf16>
    %c1 = arith.constant 1 : index
    %c0_32 = arith.constant 0 : index
    %c0_33 = arith.constant 0 : index
    %71 = vector.load %arg9[%c1, %c0_32, %c0_33] : memref<4x8x32xbf16, #tpu.memory_space<vmem>>, vector<1x8x32xbf16>
    %72 = vector.shape_cast %71 : vector<1x8x32xbf16> to vector<8x32xbf16>
    %cst_34 = arith.constant dense<0.000000e+00> : vector<48x32xf32>
    %73 = tpu.matmul %70, %72, %cst_34 {dimension_numbers = #tpu.dot_dimension_numbers<[1], [0], [0], [1], [0, 0, 1, 1], [], []>} : vector<48x8xbf16>, vector<8x32xbf16>, vector<48x32xf32> -> vector<48x32xf32>
    %74 = arith.addf %49, %73 : vector<48x32xf32>
    %75 = vector.extract_strided_slice %21 {offsets = [0, 0, 16], sizes = [6, 8, 8], strides = [1, 1, 1]} : vector<6x8x32xf32> to vector<6x8x8xf32>
    %76 = arith.truncf %75 : vector<6x8x8xf32> to vector<6x8x8xbf16>
    %77 = vector.extract_strided_slice %22 {offsets = [0, 0, 16], sizes = [6, 12, 8], strides = [1, 1, 1]} : vector<6x12x32xf32> to vector<6x12x8xf32>
    %78 = arith.truncf %77 : vector<6x12x8xf32> to vector<6x12x8xbf16>
    %79 = vector.extract_strided_slice %23 {offsets = [0, 0, 16], sizes = [6, 12, 8], strides = [1, 1, 1]} : vector<6x12x32xf32> to vector<6x12x8xf32>
    %80 = arith.truncf %79 : vector<6x12x8xf32> to vector<6x12x8xbf16>
    "tpu.trace_start"() <{level = 10 : i32, message = "bqd,bkd->bqk"}> : () -> ()
    %cst_35 = arith.constant dense<0.000000e+00> : vector<6x8x12xf32>
    %81 = tpu.matmul %76, %78, %cst_35 {dimension_numbers = #tpu.dot_dimension_numbers<[2], [2], [1], [1], [0, 0, 0, 1, 1, 1], [0], [0]>} : vector<6x8x8xbf16>, vector<6x12x8xbf16>, vector<6x8x12xf32> -> vector<6x8x12xf32>
    "tpu.trace_stop"() : () -> ()
    %cst_36 = arith.constant dense<0xFF800000> : vector<6x8xf32>
    %82 = vector.multi_reduction <maximumf>, %81, %cst_36 [2] : vector<6x8x12xf32> to vector<6x8xf32>
    %83 = vector.shape_cast %82 : vector<6x8xf32> to vector<6x8x1xf32>
    %84 = vector.broadcast %83 : vector<6x8x1xf32> to vector<6x8x12xf32>
    %85 = arith.subf %81, %84 : vector<6x8x12xf32>
    %86 = math.exp %85 : vector<6x8x12xf32>
    %cst_37 = arith.constant dense<0.000000e+00> : vector<6x8xf32>
    %87 = vector.multi_reduction <add>, %86, %cst_37 [2] : vector<6x8x12xf32> to vector<6x8xf32>
    %88 = vector.shape_cast %87 : vector<6x8xf32> to vector<6x8x1xf32>
    %89 = tpu.reciprocal %88 : vector<6x8x1xf32> -> vector<6x8x1xf32>
    %90 = vector.broadcast %89 : vector<6x8x1xf32> to vector<6x8x12xf32>
    %91 = arith.mulf %86, %90 : vector<6x8x12xf32>
    %92 = arith.truncf %91 : vector<6x8x12xf32> to vector<6x8x12xbf16>
    "tpu.trace_start"() <{level = 10 : i32, message = "bqk,bkd->bqd"}> : () -> ()
    %cst_38 = arith.constant dense<0.000000e+00> : vector<6x8x8xf32>
    %93 = tpu.matmul %92, %80, %cst_38 {dimension_numbers = #tpu.dot_dimension_numbers<[2], [1], [1], [2], [0, 0, 0, 1, 1, 2], [0], [0]>} : vector<6x8x12xbf16>, vector<6x12x8xbf16>, vector<6x8x8xf32> -> vector<6x8x8xf32>
    "tpu.trace_stop"() : () -> ()
    %94 = vector.shape_cast %93 : vector<6x8x8xf32> to vector<48x8xf32>
    %95 = arith.truncf %94 : vector<48x8xf32> to vector<48x8xbf16>
    %c2 = arith.constant 2 : index
    %c0_39 = arith.constant 0 : index
    %c0_40 = arith.constant 0 : index
    %96 = vector.load %arg9[%c2, %c0_39, %c0_40] : memref<4x8x32xbf16, #tpu.memory_space<vmem>>, vector<1x8x32xbf16>
    %97 = vector.shape_cast %96 : vector<1x8x32xbf16> to vector<8x32xbf16>
    %cst_41 = arith.constant dense<0.000000e+00> : vector<48x32xf32>
    %98 = tpu.matmul %95, %97, %cst_41 {dimension_numbers = #tpu.dot_dimension_numbers<[1], [0], [0], [1], [0, 0, 1, 1], [], []>} : vector<48x8xbf16>, vector<8x32xbf16>, vector<48x32xf32> -> vector<48x32xf32>
    %99 = arith.addf %74, %98 : vector<48x32xf32>
    %100 = vector.extract_strided_slice %21 {offsets = [0, 0, 24], sizes = [6, 8, 8], strides = [1, 1, 1]} : vector<6x8x32xf32> to vector<6x8x8xf32>
    %101 = arith.truncf %100 : vector<6x8x8xf32> to vector<6x8x8xbf16>
    %102 = vector.extract_strided_slice %22 {offsets = [0, 0, 24], sizes = [6, 12, 8], strides = [1, 1, 1]} : vector<6x12x32xf32> to vector<6x12x8xf32>
    %103 = arith.truncf %102 : vector<6x12x8xf32> to vector<6x12x8xbf16>
    %104 = vector.extract_strided_slice %23 {offsets = [0, 0, 24], sizes = [6, 12, 8], strides = [1, 1, 1]} : vector<6x12x32xf32> to vector<6x12x8xf32>
    %105 = arith.truncf %104 : vector<6x12x8xf32> to vector<6x12x8xbf16>
    "tpu.trace_start"() <{level = 10 : i32, message = "bqd,bkd->bqk"}> : () -> ()
    %cst_42 = arith.constant dense<0.000000e+00> : vector<6x8x12xf32>
    %106 = tpu.matmul %101, %103, %cst_42 {dimension_numbers = #tpu.dot_dimension_numbers<[2], [2], [1], [1], [0, 0, 0, 1, 1, 1], [0], [0]>} : vector<6x8x8xbf16>, vector<6x12x8xbf16>, vector<6x8x12xf32> -> vector<6x8x12xf32>
    "tpu.trace_stop"() : () -> ()
    %cst_43 = arith.constant dense<0xFF800000> : vector<6x8xf32>
    %107 = vector.multi_reduction <maximumf>, %106, %cst_43 [2] : vector<6x8x12xf32> to vector<6x8xf32>
    %108 = vector.shape_cast %107 : vector<6x8xf32> to vector<6x8x1xf32>
    %109 = vector.broadcast %108 : vector<6x8x1xf32> to vector<6x8x12xf32>
    %110 = arith.subf %106, %109 : vector<6x8x12xf32>
    %111 = math.exp %110 : vector<6x8x12xf32>
    %cst_44 = arith.constant dense<0.000000e+00> : vector<6x8xf32>
    %112 = vector.multi_reduction <add>, %111, %cst_44 [2] : vector<6x8x12xf32> to vector<6x8xf32>
    %113 = vector.shape_cast %112 : vector<6x8xf32> to vector<6x8x1xf32>
    %114 = tpu.reciprocal %113 : vector<6x8x1xf32> -> vector<6x8x1xf32>
    %115 = vector.broadcast %114 : vector<6x8x1xf32> to vector<6x8x12xf32>
    %116 = arith.mulf %111, %115 : vector<6x8x12xf32>
    %117 = arith.truncf %116 : vector<6x8x12xf32> to vector<6x8x12xbf16>
    "tpu.trace_start"() <{level = 10 : i32, message = "bqk,bkd->bqd"}> : () -> ()
    %cst_45 = arith.constant dense<0.000000e+00> : vector<6x8x8xf32>
    %118 = tpu.matmul %117, %105, %cst_45 {dimension_numbers = #tpu.dot_dimension_numbers<[2], [1], [1], [2], [0, 0, 0, 1, 1, 2], [0], [0]>} : vector<6x8x12xbf16>, vector<6x12x8xbf16>, vector<6x8x8xf32> -> vector<6x8x8xf32>
    "tpu.trace_stop"() : () -> ()
    %119 = vector.shape_cast %118 : vector<6x8x8xf32> to vector<48x8xf32>
    %120 = arith.truncf %119 : vector<48x8xf32> to vector<48x8xbf16>
    %c3 = arith.constant 3 : index
    %c0_46 = arith.constant 0 : index
    %c0_47 = arith.constant 0 : index
    %121 = vector.load %arg9[%c3, %c0_46, %c0_47] : memref<4x8x32xbf16, #tpu.memory_space<vmem>>, vector<1x8x32xbf16>
    %122 = vector.shape_cast %121 : vector<1x8x32xbf16> to vector<8x32xbf16>
    %cst_48 = arith.constant dense<0.000000e+00> : vector<48x32xf32>
    %123 = tpu.matmul %120, %122, %cst_48 {dimension_numbers = #tpu.dot_dimension_numbers<[1], [0], [0], [1], [0, 0, 1, 1], [], []>} : vector<48x8xbf16>, vector<8x32xbf16>, vector<48x32xf32> -> vector<48x32xf32>
    %124 = arith.addf %99, %123 : vector<48x32xf32>
    %c0_49 = arith.constant 0 : index
    %c0_50 = arith.constant 0 : index
    %125 = vector.load %arg10[%c0_49, %c0_50] : memref<1x32xf32, #tpu.memory_space<vmem>>, vector<1x32xf32>
    %126 = vector.broadcast %125 : vector<1x32xf32> to vector<48x32xf32>
    %127 = arith.addf %124, %126 : vector<48x32xf32>
    %128 = arith.addf %127, %1 : vector<48x32xf32>
    %129 = arith.truncf %128 : vector<48x32xf32> to vector<48x32xbf16>
    %c0_51 = arith.constant 0 : index
    %c0_52 = arith.constant 0 : index
    %130 = vector.load %arg11[%c0_51, %c0_52] : memref<32x64xbf16, #tpu.memory_space<vmem>>, vector<32x64xbf16>
    %cst_53 = arith.constant dense<0.000000e+00> : vector<48x64xf32>
    %131 = tpu.matmul %129, %130, %cst_53 {dimension_numbers = #tpu.dot_dimension_numbers<[1], [0], [0], [1], [0, 0, 1, 1], [], []>} : vector<48x32xbf16>, vector<32x64xbf16>, vector<48x64xf32> -> vector<48x64xf32>
    %c0_54 = arith.constant 0 : index
    %c0_55 = arith.constant 0 : index
    %132 = vector.load %arg12[%c0_54, %c0_55] : memref<1x64xf32, #tpu.memory_space<vmem>>, vector<1x64xf32>
    %133 = vector.broadcast %132 : vector<1x64xf32> to vector<48x64xf32>
    %134 = arith.addf %131, %133 : vector<48x64xf32>
    %cst_56 = arith.constant 0.000000e+00 : f32
    %135 = vector.broadcast %cst_56 : f32 to vector<48x64xf32>
    %136 = arith.maximumf %134, %135 : vector<48x64xf32>
    %137 = arith.truncf %136 : vector<48x64xf32> to vector<48x64xbf16>
    %c0_57 = arith.constant 0 : index
    %c0_58 = arith.constant 0 : index
    %138 = vector.load %arg13[%c0_57, %c0_58] : memref<64x32xbf16, #tpu.memory_space<vmem>>, vector<64x32xbf16>
    %cst_59 = arith.constant dense<0.000000e+00> : vector<48x32xf32>
    %139 = tpu.matmul %137, %138, %cst_59 {dimension_numbers = #tpu.dot_dimension_numbers<[1], [0], [0], [1], [0, 0, 1, 1], [], []>} : vector<48x64xbf16>, vector<64x32xbf16>, vector<48x32xf32> -> vector<48x32xf32>
    %c0_60 = arith.constant 0 : index
    %c0_61 = arith.constant 0 : index
    %140 = vector.load %arg14[%c0_60, %c0_61] : memref<1x32xf32, #tpu.memory_space<vmem>>, vector<1x32xf32>
    %141 = vector.broadcast %140 : vector<1x32xf32> to vector<48x32xf32>
    %142 = arith.addf %139, %141 : vector<48x32xf32>
    %143 = arith.addf %142, %128 : vector<48x32xf32>
    %144 = vector.shape_cast %143 : vector<48x32xf32> to vector<6x8x32xf32>
    %c0_62 = arith.constant 0 : index
    %c0_63 = arith.constant 0 : index
    %c0_64 = arith.constant 0 : index
    %145 = vector.load %arg15[%c0_62, %c0_63, %c0_64] : memref<6x8x32xf32, #tpu.memory_space<vmem>>, vector<6x8x32xf32>
    tpu.vector_store %arg15[%c0_62, %c0_63, %c0_64], %144 {strides = array<i32>} : memref<6x8x32xf32, #tpu.memory_space<vmem>>, vector<6x8x32xf32>,
    return
  }
  func.func @transform_0(%arg0: i32) -> (i32, i32, i32) {
    %c0_i32 = arith.constant 0 : i32
    %c0_i32_0 = arith.constant 0 : i32
    %c0_i32_1 = arith.constant 0 : i32
    return %arg0, %c0_i32, %c0_i32_0 : i32, i32, i32
  }
  func.func @transform_1(%arg0: i32) -> (i32, i32, i32) {
    %c0_i32 = arith.constant 0 : i32
    %c0_i32_0 = arith.constant 0 : i32
    %c0_i32_1 = arith.constant 0 : i32
    return %arg0, %c0_i32, %c0_i32_0 : i32, i32, i32
  }
  func.func @transform_2(%arg0: i32) -> (i32, i32) {
    %c0_i32 = arith.constant 0 : i32
    %c0_i32_0 = arith.constant 0 : i32
    %c0_i32_1 = arith.constant 0 : i32
    return %c0_i32, %c0_i32_0 : i32, i32
  }
  func.func @transform_3(%arg0: i32) -> (i32, i32) {
    %c0_i32 = arith.constant 0 : i32
    %c0_i32_0 = arith.constant 0 : i32
    %c0_i32_1 = arith.constant 0 : i32
    return %c0_i32, %c0_i32_0 : i32, i32
  }
  func.func @transform_4(%arg0: i32) -> (i32, i32) {
    %c0_i32 = arith.constant 0 : i32
    %c0_i32_0 = arith.constant 0 : i32
    %c0_i32_1 = arith.constant 0 : i32
    return %c0_i32, %c0_i32_0 : i32, i32
  }
  func.func @transform_5(%arg0: i32) -> (i32, i32) {
    %c0_i32 = arith.constant 0 : i32
    %c0_i32_0 = arith.constant 0 : i32
    %c0_i32_1 = arith.constant 0 : i32
    return %c0_i32, %c0_i32_0 : i32, i32
  }
  func.func @transform_6(%arg0: i32) -> (i32, i32) {
    %c0_i32 = arith.constant 0 : i32
    %c0_i32_0 = arith.constant 0 : i32
    %c0_i32_1 = arith.constant 0 : i32
    return %c0_i32, %c0_i32_0 : i32, i32
  }
  func.func @transform_7(%arg0: i32) -> (i32, i32) {
    %c0_i32 = arith.constant 0 : i32
    %c0_i32_0 = arith.constant 0 : i32
    %c0_i32_1 = arith.constant 0 : i32
    return %c0_i32, %c0_i32_0 : i32, i32
  }
  func.func @transform_8(%arg0: i32) -> (i32, i32, i32) {
    %c0_i32 = arith.constant 0 : i32
    %c0_i32_0 = arith.constant 0 : i32
    %c0_i32_1 = arith.constant 0 : i32
    %c0_i32_2 = arith.constant 0 : i32
    return %c0_i32, %c0_i32_0, %c0_i32_1 : i32, i32, i32
  }
  func.func @transform_9(%arg0: i32) -> (i32, i32) {
    %c0_i32 = arith.constant 0 : i32
    %c0_i32_0 = arith.constant 0 : i32
    %c0_i32_1 = arith.constant 0 : i32
    return %c0_i32, %c0_i32_0 : i32, i32
  }
  func.func @transform_10(%arg0: i32) -> (i32, i32) {
    %c0_i32 = arith.constant 0 : i32
    %c0_i32_0 = arith.constant 0 : i32
    %c0_i32_1 = arith.constant 0 : i32
    return %c0_i32, %c0_i32_0 : i32, i32
  }
  func.func @transform_11(%arg0: i32) -> (i32, i32) {
    %c0_i32 = arith.constant 0 : i32
    %c0_i32_0 = arith.constant 0 : i32
    %c0_i32_1 = arith.constant 0 : i32
    return %c0_i32, %c0_i32_0 : i32, i32
  }
  func.func @transform_12(%arg0: i32) -> (i32, i32) {
    %c0_i32 = arith.constant 0 : i32
    %c0_i32_0 = arith.constant 0 : i32
    %c0_i32_1 = arith.constant 0 : i32
    return %c0_i32, %c0_i32_0 : i32, i32
  }
  func.func @transform_13(%arg0: i32) -> (i32, i32) {
    %c0_i32 = arith.constant 0 : i32
    %c0_i32_0 = arith.constant 0 : i32
    %c0_i32_1 = arith.constant 0 : i32
    return %c0_i32, %c0_i32_0 : i32, i32
  }
  func.func @transform_14(%arg0: i32) -> (i32, i32, i32) {
    %c0_i32 = arith.constant 0 : i32
    %c0_i32_0 = arith.constant 0 : i32
    %c0_i32_1 = arith.constant 0 : i32
    return %arg0, %c0_i32, %c0_i32_0 : i32, i32, i32
  }
}

</mosaic_0001>

<bundles_post_ra>
// kernel: tpu_custom_call.1
= control target key start
LH: loop header
LB: loop body
LE: loop exit
PB: predicated region body
PF: predicated region fallthrough
CT: control target
= control target key end

     0   :  { %19 = vsyncpa [#allocation3], 0  ;;  %s5815_s0 = inlined_call_operand.vmem [shape: f32[6,8,32], index: 0, kind: input, shape index: {}]   ;;  %s5816_s1 = inlined_call_operand.hbm [shape: f32[6,12,32], index: 1, kind: input, shape index: {}]   ;;  %s5817_s2 = inlined_call_operand.hbm [shape: bf16[32,32], index: 2, kind: input, shape index: {}]   ;;  %s5818_s3 = inlined_call_operand.vmem [shape: f32[1,32], index: 3, kind: input, shape index: {}]   ;;  %s5819_s4 = inlined_call_operand.hbm [shape: bf16[32,32], index: 4, kind: input, shape index: {}]   ;;  %s5820_s5 = inlined_call_operand.vmem [shape: f32[1,32], index: 5, kind: input, shape index: {}]   ;;  %s5821_s6 = inlined_call_operand.hbm [shape: bf16[32,32], index: 6, kind: input, shape index: {}]   ;;  %s5822_s7 = inlined_call_operand.hbm [shape: f32[1,32], index: 7, kind: input, shape index: {}]   ;;  %s5823_s8 = inlined_call_operand.hbm [shape: bf16[4,8,32], index: 8, kind: input, shape index: {}]   ;;  %s5824_s9 = inlined_call_operand.hbm [shape: f32[1,32], index: 9, kind: input, shape index: {}]   ;;  %s5825_s10 = inlined_call_operand.vmem [shape: bf16[32,64], index: 10, kind: input, shape index: {}]   ;;  %s5826_s11 = inlined_call_operand.vmem [shape: f32[1,64], index: 11, kind: input, shape index: {}]   ;;  %s5827_s12 = inlined_call_operand.vmem [shape: bf16[64,32], index: 12, kind: input, shape index: {}]   ;;  %s5828_s13 = inlined_call_operand.vmem [shape: f32[1,32], index: 13, kind: input, shape index: {}]   ;;  %s5829_s14 = inlined_call_operand.hbm [shape: f32[6,8,32], index: 14, kind: output, shape index: {}]  }
   0x1   :  { %20 = vsyncpa [#allocation6], 0 }
   0x2   :  { %21 = vsyncpa [#allocation9], 0 }
   0x3   :  { %22 = vsyncpa [#allocation12], 0 }
   0x4   :  { %23 = vsyncpa [#allocation4], 0  ;;  %s4786_s29 = smov [#allocation5]   ;;  %s4600_s17 = scalar_lea.hbm %s5817_s2, 256 }
   0x5   :  { %s43_s30 = sshll.u32 %s4786_s29, 4  ;;  %p4601_p0 = scmp.ne.s32.totalorder %s5817_s2, %s4600_s17  ;;  %s44_s30 = int_to_ptr.vmem [resolvable:$true] %s43_s30 }
   0x6   :  { %p4604_p1 = scmp.lt.u32.totalorder %s4600_s17, %s5817_s2 }
   0x8   :  { %p4606_p2 = pnand %p4604_p1, %p4601_p0 }
   0xa   :  { %4609 = shalt.err (!%p4606_p2)
}
   0xb   :  { %s4610_s22 = scalar_lea.vmem %s44_s30, 256  ;;  %p4615_p4 = scmp.lt.s32.totalorder %s44_s30, %s44_s30 }
   0xc   :  { %p4611_p3 = scmp.ne.s32.totalorder %s44_s30, %s4610_s22  ;;  %p4616_p5 = scmp.lt.s32.totalorder %s4610_s22, %s4610_s22 }
   0xe   :  { %p4617_p6 = por %p4616_p5, %p4615_p4 }
  0x10   :  { %p4618_p7 = pnand %p4617_p6, %p4611_p3 }
  0x12   :  { %4621 = shalt.err (!%p4618_p7)
}
  0x13   :  { %s4787_s23 = smov 64   ;;  %s4788_s24 = smov 4  }
  0x14   :  { %49 = dma.hbm_to_vmem [thread:$0]  %s5817_s2, 256, %s44_s30, [#allocation6], %s4787_s23, %s4787_s23, %s4788_s24  }
  0x15   :  { %s4789_s27 = smov [#allocation8]   ;;  %s4790_s29 = smov [#allocation11]  }
  0x16   :  { %s71_s28 = sshll.u32 %s4789_s27, 4  ;;  %s93_s15 = sshll.u32 %s4790_s29, 4  ;;  %s72_s28 = int_to_ptr.vmem [resolvable:$true] %s71_s28  ;;  %s94_s15 = int_to_ptr.vmem [resolvable:$true] %s93_s15 }
  0x17   :  { %s4622_s18 = scalar_lea.hbm %s5821_s6, 256 }
  0x18   :  { %p4623_p8 = scmp.ne.s32.totalorder %s5821_s6, %s4622_s18  ;;  %p4626_p9 = scmp.lt.u32.totalorder %s4622_s18, %s5821_s6 }
  0x1a   :  { %p4628_p10 = pnand %p4626_p9, %p4623_p8 }
  0x1c   :  { %4631 = shalt.err (!%p4628_p10)
}
  0x1d   :  { %s4632_s2 = scalar_lea.vmem %s72_s28, 256  ;;  %p4637_p12 = scmp.lt.s32.totalorder %s72_s28, %s72_s28 }
  0x1e   :  { %p4633_p11 = scmp.ne.s32.totalorder %s72_s28, %s4632_s2  ;;  %p4638_p13 = scmp.lt.s32.totalorder %s4632_s2, %s4632_s2 }
  0x20   :  { %p4639_p0 = por %p4638_p13, %p4637_p12 }
  0x22   :  { %p4640_p1 = pnand %p4639_p0, %p4633_p11 }
  0x24   :  { %4643 = shalt.err (!%p4640_p1)
}
  0x25   :  { %77 = dma.hbm_to_vmem [thread:$0]  %s5821_s6, 256, %s72_s28, [#allocation9], %s4787_s23, %s4787_s23, %s4788_s24  }
  0x26   :  { %s4644_s29 = scalar_lea.hbm %s5823_s8, 256 }
  0x27   :  { %p4645_p2 = scmp.ne.s32.totalorder %s5823_s8, %s4644_s29  ;;  %p4648_p3 = scmp.lt.u32.totalorder %s4644_s29, %s5823_s8 }
  0x29   :  { %p4650_p4 = pnand %p4648_p3, %p4645_p2 }
  0x2b   :  { %4653 = shalt.err (!%p4650_p4)
}
  0x2c   :  { %s4654_s20 = scalar_lea.vmem %s94_s15, 256  ;;  %p4659_p6 = scmp.lt.s32.totalorder %s94_s15, %s94_s15 }
  0x2d   :  { %p4655_p5 = scmp.ne.s32.totalorder %s94_s15, %s4654_s20  ;;  %p4660_p7 = scmp.lt.s32.totalorder %s4654_s20, %s4654_s20 }
  0x2f   :  { %p4661_p8 = por %p4660_p7, %p4659_p6 }
  0x31   :  { %p4662_p9 = pnand %p4661_p8, %p4655_p5 }
  0x33   :  { %4665 = shalt.err (!%p4662_p9)
}
  0x34   :  { %99 = dma.hbm_to_vmem [thread:$0]  %s5823_s8, 256, %s94_s15, [#allocation12], %s4787_s23, %s4787_s23, %s4788_s24  }
  0x35   :  { %s4791_s21 = smov [#allocation2]   ;;  %s4666_s25 = scalar_lea.hbm %s5816_s1, 1536 }
  0x36   :  { %s31_s22 = sshll.u32 %s4791_s21, 4  ;;  %p4667_p10 = scmp.ne.s32.totalorder %s5816_s1, %s4666_s25  ;;  %s32_s22 = int_to_ptr.vmem [resolvable:$true] %s31_s22 }
  0x37   :  { %p4670_p11 = scmp.lt.u32.totalorder %s4666_s25, %s5816_s1 }
  0x39   :  { %p4672_p12 = pnand %p4670_p11, %p4667_p10 }
  0x3b   :  { %4675 = shalt.err (!%p4672_p12)
}
  0x3c   :  { %s4676_s17 = scalar_lea.vmem %s32_s22, 1536  ;;  %p4681_p0 = scmp.lt.s32.totalorder %s32_s22, %s32_s22 }
  0x3d   :  { %p4677_p13 = scmp.ne.s32.totalorder %s32_s22, %s4676_s17  ;;  %p4682_p1 = scmp.lt.s32.totalorder %s4676_s17, %s4676_s17 }
  0x3f   :  { %p4683_p2 = por %p4682_p1, %p4681_p0 }
  0x41   :  { %p4684_p3 = pnand %p4683_p2, %p4677_p13 }
  0x43   :  { %4687 = shalt.err (!%p4684_p3)
}
  0x44   :  { %s4792_s8 = smov 128   ;;  %s4793_s15 = smov 8  }
  0x45   :  { %37 = dma.hbm_to_vmem [thread:$0]  %s5816_s1, 1536, %s32_s22, [#allocation3], %s4792_s8, %s4792_s8, %s4793_s15  }
  0x46   :  { %s4794_s20 = smov [#allocation7]   ;;  %s4795_s28 = smov [#allocation10]  }
  0x47   :  { %s57_s6 = sshll.u32 %s4794_s20, 4  ;;  %s84_s21 = sshll.u32 %s4795_s28, 4  ;;  %s58_s6 = int_to_ptr.vmem [resolvable:$true] %s57_s6  ;;  %s85_s21 = int_to_ptr.vmem [resolvable:$true] %s84_s21 }
  0x48   :  { %s4688_s25 = scalar_lea.hbm %s5819_s4, 256 }
  0x49   :  { %p4689_p4 = scmp.ne.s32.totalorder %s5819_s4, %s4688_s25  ;;  %p4692_p5 = scmp.lt.u32.totalorder %s4688_s25, %s5819_s4 }
  0x4b   :  { %p4694_p6 = pnand %p4692_p5, %p4689_p4 }
  0x4d   :  { %4697 = shalt.err (!%p4694_p6)
}
  0x4e   :  { %s4698_s1 = scalar_lea.vmem %s58_s6, 256  ;;  %p4703_p8 = scmp.lt.s32.totalorder %s58_s6, %s58_s6 }
  0x4f   :  { %p4699_p7 = scmp.ne.s32.totalorder %s58_s6, %s4698_s1  ;;  %p4704_p9 = scmp.lt.s32.totalorder %s4698_s1, %s4698_s1 }
  0x51   :  { %p4705_p10 = por %p4704_p9, %p4703_p8 }
  0x53   :  { %p4706_p11 = pnand %p4705_p10, %p4699_p7 }
  0x55   :  { %4709 = shalt.err (!%p4706_p11)
}
  0x56   :  { %63 = dma.hbm_to_vmem [thread:$0]  %s5819_s4, 256, %s58_s6, [#allocation6], %s4787_s23, %s4787_s23, %s4788_s24  }
  0x57   :  { %s4710_s20 = scalar_lea.hbm %s5822_s7, 16 }
  0x58   :  { %p4711_p12 = scmp.ne.s32.totalorder %s5822_s7, %s4710_s20  ;;  %p4714_p13 = scmp.lt.u32.totalorder %s4710_s20, %s5822_s7 }
  0x5a   :  { %p4716_p0 = pnand %p4714_p13, %p4711_p12 }
  0x5c   :  { %4719 = shalt.err (!%p4716_p0)
}
  0x5d   :  { %s4720_s26 = scalar_lea.vmem %s85_s21, 16  ;;  %s4724_s27 = scalar_lea.vmem %s85_s21, 32 }
  0x5e   :  { %p4721_p1 = scmp.ne.s32.totalorder %s85_s21, %s4720_s26  ;;  %p4725_p2 = scmp.lt.s32.totalorder %s85_s21, %s85_s21 }
  0x5f   :  { %p4726_p3 = scmp.lt.s32.totalorder %s4724_s27, %s4720_s26 }
  0x61   :  { %p4727_p4 = por %p4726_p3, %p4725_p2 }
  0x63   :  { %p4728_p5 = pnand %p4727_p4, %p4721_p1 }
  0x65   :  { %4731 = shalt.err (!%p4728_p5)
}
  0x66   :  { %87 = dma.hbm_to_vmem [thread:$0]  %s5822_s7, 16, %s85_s21, [#allocation9]  }
  0x67   :  { %s4796_s24 = smov [#allocation13]   ;;  %s4732_s1 = scalar_lea.hbm %s5824_s9, 16 }
  0x68   :  { %s106_s6 = sshll.u32 %s4796_s24, 4  ;;  %p4733_p6 = scmp.ne.s32.totalorder %s5824_s9, %s4732_s1  ;;  %s107_s6 = int_to_ptr.vmem [resolvable:$true] %s106_s6 }
  0x69   :  { %p4736_p7 = scmp.lt.u32.totalorder %s4732_s1, %s5824_s9 }
  0x6b   :  { %p4738_p8 = pnand %p4736_p7, %p4733_p6 }
  0x6d   :  { %4741 = shalt.err (!%p4738_p8)
}
  0x6e   :  { %s4742_s20 = scalar_lea.vmem %s107_s6, 16  ;;  %s4746_s7 = scalar_lea.vmem %s107_s6, 32 }
  0x6f   :  { %p4743_p9 = scmp.ne.s32.totalorder %s107_s6, %s4742_s20  ;;  %p4747_p10 = scmp.lt.s32.totalorder %s107_s6, %s107_s6 }
  0x70   :  { %p4748_p11 = scmp.lt.s32.totalorder %s4746_s7, %s4742_s20 }
  0x72   :  { %p4749_p12 = por %p4748_p11, %p4747_p10 }
  0x74   :  { %p4750_p13 = pnand %p4749_p12, %p4743_p9 }
  0x76   :  { %4753 = shalt.err (!%p4750_p13)
}
  0x77   :  { %109 = dma.hbm_to_vmem [thread:$0]  %s5824_s9, 16, %s107_s6, [#allocation12]  }
  0x78   :  { %4776 = dma.done.wait [#allocation3], 1536  }
  0x79   :  { %4777 = vsyncadd [#allocation3], 4294965760 }
  0x7a   :  { %4778 = dma.done.wait [#allocation6], 512  }
  0x7b   :  { %4779 = vsyncadd [#allocation6], 4294966784 }
  0x7c   :  { %4780 = dma.done.wait [#allocation9], 272  }
  0x7d   :  { %4781 = vsyncadd [#allocation9], 4294967024 }
  0x7e   :  { %4782 = dma.done.wait [#allocation12], 272  }
  0x7f   :  { %4783 = vsyncadd [#allocation12], 4294967024  ;;  %v4797_v0 = vmov 0.0   ;;  %vm4798_vm0 = vmmov 0   ;;  %v4477_v1 = vld [vmem:[#allocation5] sm:$0xff]   ;;  %v4478_v2 = vld [vmem:[#allocation5 + $0x8] sm:$0xff]  }
  0x80   :  { %4456 = vmatprep.subr.bf16.mxu1 %v4797_v0  ;;  %4020 = vmatprep.mubr.msk.bf16.mxu1 %vm4798_vm0, %v4797_v0  ;;  %v142_v3 = vld [vmem:[%s5815_s0 + $0x10] sm:$0xff]  ;;  %v143_v4 = vld [vmem:[%s5815_s0 + $0x18] sm:$0xff]  ;;  %vm225_vm1 = vcmask 261120   ;;  %v140_v7 = vld [vmem:[%s5815_s0] sm:$0xff]  ;;  %vm581_vm2 = vcmask 64512   ;;  %vm934_vm3 = vcmask 1045504  }
  0x81   :  { %4012 = vmatprep.subr.bf16.mxu0 %v4797_v0  ;;  %4016 = vmatprep.mubr.msk.bf16.mxu0 %vm4798_vm0, %v4797_v0  ;;  %v177_v5 = vpack.c.bf16 %v143_v4, %v142_v3  ;;  %v4479_v6 = vld [vmem:[#allocation7] sm:$0xff]   ;;  %v141_v8 = vld [vmem:[%s5815_s0 + $0x8] sm:$0xff]  ;;  %v144_v10 = vld [vmem:[%s5815_s0 + $0x20] sm:$0xff]  ;;  %vm858_vm4 = vcmask 97280   ;;  %vm1904_vm5 = vcmask 1043456   ;;  %s4801_s19 = smov 104  }
  0x82   :  { %4458 = vmatpush3.bf16.msra.mxu1 %v4477_v1  ;;  %4013 = vmatpush3.bf16.msra.mxu0 %v4477_v1  ;;  %v176_v9 = vpack.c.bf16 %v141_v8, %v140_v7  ;;  %v145_v11 = vld [vmem:[%s5815_s0 + $0x28] sm:$0xff]  ;;  %v4480_v12 = vld [vmem:[#allocation7 + $0x8] sm:$0xff]   ;;  %v146_v13 = vld [vmem:[#allocation2] sm:$0xff]  ;;  %vm3673_vm6 = vcmask 523264  }
  0x83   :  { %4457 = vmatprep.subr.bf16.mxu1 %v4797_v0  ;;  %4014 = vmatprep.subr.bf16.mxu0 %v4797_v0  ;;  %v147_v14 = vld [vmem:[#allocation2 + $0x8] sm:$0xf]  ;;  %v148_v15 = vld [vmem:[#allocation2 + $0x10] sm:$0xff]  ;;  %v178_v16 = vpack.c.bf16 %v145_v11, %v144_v10  ;;  %v170_v17 = vcombine.high %v146_v13, %v146_v13  ;;  %v150_v20 = vld [vmem:[#allocation2 + $0x20] sm:$0xff] }
  0x84   :  { %v180_v19 = vcombine.low %v147_v14, %v148_v15  ;;  %v171_v22 = vcombine.high %v148_v15, %v148_v15  ;;  %v172_v23 = vcombine.high %v150_v20, %v150_v20  ;;  %v149_v24 = vld [vmem:[#allocation2 + $0x18] sm:$0xf]  ;;  %v152_v27 = vld [vmem:[#allocation2 + $0x30] sm:$0xff]  ;;  %v151_v30 = vld [vmem:[#allocation2 + $0x28] sm:$0xf] }
  0x85   :  { %v179_v18 = vcombine.low %v146_v13, %v170_v17  ;;  %v173_v29 = vcombine.high %v152_v27, %v152_v27  ;;  %v153_v31 = vld [vmem:[#allocation2 + $0x38] sm:$0xf]  ;;  %v183_v32 = vcombine.low %v151_v30, %v152_v27  ;;  %v154_v34 = vld [vmem:[#allocation2 + $0x40] sm:$0xff]  ;;  %v155_v37 = vld [vmem:[#allocation2 + $0x48] sm:$0xf] }
  0x86   :  { %4459 = vmatpush3.bf16.msra.mxu1 %v4478_v2  ;;  %4015 = vmatpush3.bf16.msra.mxu0 %v4478_v2  ;;  %v181_v25 = vcombine.low %v171_v22, %v149_v24  ;;  %v182_v26 = vcombine.low %v150_v20, %v172_v23  ;;  %v174_v36 = vcombine.high %v154_v34, %v154_v34  ;;  %v156_v38 = vld [vmem:[#allocation2 + $0x50] sm:$0xff]  ;;  %v157_v43 = vld [vmem:[#allocation2 + $0x58] sm:$0xf]  ;;  %v4490_v46 = vld [vmem:[#allocation8] sm:$0xff]  }
  0x87   :  { %4028 = vmatprep.subr.bf16.mxu1 %v4797_v0  ;;  %4052 = vmatprep.subr.bf16.mxu0 %v4797_v0  ;;  %v197_v21 = vpack.c.bf16 %v180_v19, %v179_v18  ;;  %v184_v33 = vcombine.low %v173_v29, %v153_v31  ;;  %v186_v40 = vcombine.low %v155_v37, %v156_v38  ;;  %v4491_v47 = vld [vmem:[#allocation8 + $0x8] sm:$0xff]   ;;  %v5059_v60 = vld [vmem:[%s5820_s5] ss:$0 sm:$0xff]  ;;  %s4800_s5 = smov 112  }
  0x88   :  { %v198_v28 = vpack.c.bf16 %v182_v26, %v181_v25  ;;  %v185_v39 = vcombine.low %v154_v34, %v174_v36  ;;  %v175_v42 = vcombine.high %v156_v38, %v156_v38  ;;  %v5068_v7 = vld [vmem:[%s5818_s3] ss:$0 sm:$0xff]  ;;  %s4799_s3 = smov 120  }
  0x89   :  { %4021 = vmatmul.mubr.msk.bf16.vlgmr.msra.gmra.mrb[0].mxu1 %vm225_vm1, %v177_v5  ;;  %4017 = vmatmul.mubr.msk.bf16.vlgmr.msra.gmra.mrb[0].mxu0 %vm225_vm1, %v176_v9  ;;  %v199_v35 = vpack.c.bf16 %v184_v33, %v183_v32 }
  0x8a   :  { %4024 = vmatprep.mubr.msk.bf16.mxu1 %vm4798_vm0, %v4797_v0  ;;  %4029 = vmatpush3.bf16.msra.mxu1 %v4479_v6  ;;  %v200_v41 = vpack.c.bf16 %v186_v40, %v185_v39  ;;  %v187_v44 = vcombine.low %v175_v42, %v157_v43 }
  0x8b   :  { %4030 = vmatprep.subr.bf16.mxu1 %v4797_v0  ;;  %4056 = vmatprep.mubr.msk.bf16.mxu0 %vm4798_vm0, %v4797_v0 }
  0x8c   :  { %v201_v45 = vpack.c.bf16 %v187_v44, %v187_v44  ;;  %4053 = vmatpush3.bf16.msra.mxu0 %v4490_v46 }
  0x8d   :  { %4054 = vmatprep.subr.bf16.mxu0 %v4797_v0 }
  0x8e   :  { %4031 = vmatpush3.bf16.msra.mxu1 %v4480_v12 }
  0x8f   :  { %4076 = vmatprep.subr.bf16.mxu1 %v4797_v0 }
  0x90   :  { %4055 = vmatpush3.bf16.msra.mxu0 %v4491_v47 }
  0x91   :  { %4025 = vmatmul.mubr.msk.bf16.gmra.mrb[4].mxu1 %vm225_vm1, %v178_v16  ;;  %4094 = vmatprep.subr.bf16.mxu0 %v4797_v0 }
  0x92   :  { %4032 = vmatprep.mubr.msk.bf16.mxu1 %vm4798_vm0, %v4797_v0 }
  0x93   :  { %4057 = vmatmul.mubr.msk.bf16.vlgmr.msra.gmra.mrb[4].mxu0 %vm225_vm1, %v197_v21 }
  0x94   :  { %4060 = vmatprep.mubr.msk.bf16.mxu0 %vm4798_vm0, %v4797_v0 }
  0x99   :  { %4033 = vmatmul.mubr.msk.bf16.vlgmr.msra.gmra.mrb[8].mxu1 %vm225_vm1, %v197_v21 }
  0x9a   :  { %4036 = vmatprep.mubr.msk.bf16.mxu1 %vm4798_vm0, %v4797_v0 }
  0x9b   :  { %4061 = vmatmul.mubr.msk.bf16.gmra.mrb[8].mxu0 %vm225_vm1, %v198_v28 }
  0x9c   :  { %4064 = vmatprep.mubr.msk.bf16.mxu0 %vm4798_vm0, %v4797_v0 }
  0xa1   :  { %4037 = vmatmul.mubr.msk.bf16.gmra.mrb[12].mxu1 %vm225_vm1, %v198_v28 }
  0xa2   :  { %4040 = vmatprep.mubr.msk.bf16.mxu1 %vm4798_vm0, %v4797_v0 }
  0xa3   :  { %4065 = vmatmul.mubr.msk.bf16.gmra.mrb[12].mxu0 %vm225_vm1, %v199_v35 }
  0xa4   :  { %4068 = vmatprep.mubr.msk.bf16.mxu0 %vm4798_vm0, %v4797_v0 }
  0xa9   :  { %4041 = vmatmul.mubr.msk.bf16.gmra.mrb[16].mxu1 %vm225_vm1, %v199_v35 }
  0xaa   :  { %4044 = vmatprep.mubr.msk.bf16.mxu1 %vm4798_vm0, %v4797_v0 }
  0xab   :  { %4069 = vmatmul.mubr.msk.bf16.gmra.mrb[16].mxu0 %vm225_vm1, %v200_v41 }
  0xac   :  { %4072 = vmatprep.mubr.msk.bf16.mxu0 %vm4798_vm0, %v4797_v0 }
  0xb1   :  { %4045 = vmatmul.mubr.msk.bf16.gmra.mrb[20].mxu1 %vm225_vm1, %v200_v41 }
  0xb2   :  { %4048 = vmatprep.mubr.msk.bf16.mxu1 %vm4798_vm0, %v4797_v0 }
  0xb3   :  { %4073 = vmatmul.mubr.msk.bf16.gmra.mrb[20].mxu0 %vm225_vm1, %v201_v45 }
  0xb4   :  { %4096 = vmatprep.mubr.msk.bf16.mxu0 %vm4798_vm0, %v4797_v0 }
  0xb9   :  { %4049 = vmatmul.mubr.msk.bf16.gmra.mrb[24].mxu1 %vm225_vm1, %v201_v45 }
  0xba   :  { %4078 = vmatprep.mubr.msk.bf16.mxu1 %vm4798_vm0, %v4797_v0 }
 0x15c   :  { %v5048_v48 = vpop.f32.mrb[0].mxu1  ;;  %v269_v51 = vpop.f32.mrb[0].mxu0 }
 0x15d   :  { %v4022_v49 = vpop.f32.mrb[1].mxu1  ;;  %v4018_v53 = vpop.f32.mrb[1].mxu0  ;;  %v270_v13 = vadd.f32 %v5068_v7, %v269_v51  ;;  %v278_v42 = vadd.f32 %v5068_v7, %v5048_v48 }
 0x15e   :  { %v5050_v50 = vpop.f32.mrb[2].mxu1  ;;  %v272_v54 = vpop.f32.mrb[2].mxu0 }
 0x15f   :  { %v4023_v52 = vpop.f32.mrb[3].mxu1  ;;  %v4019_v55 = vpop.f32.mrb[3].mxu0  ;;  %v5078_v21 = vpack.c.bf16 %v270_v13, %v270_v13  ;;  %v273_v31 = vadd.f32 %v5068_v7, %v272_v54  ;;  %v281_v44 = vadd.f32 %v5068_v7, %v5050_v50  ;;  %v5112_v51 = vpack.c.bf16 %v278_v42, %v278_v42 }
 0x161   :  { %v5094_v36 = vpack.c.bf16 %v273_v31, %v273_v31  ;;  %v5114_v48 = vpack.c.bf16 %v281_v44, %v281_v44 }
 0x164   :  { %v5052_v56 = vpop.f32.mrb[4].mxu1 }
 0x165   :  { %v4026_v57 = vpop.f32.mrb[5].mxu1 }
 0x166   :  { %v5054_v58 = vpop.f32.mrb[6].mxu1 }
 0x167   :  { %v4027_v59 = vpop.f32.mrb[7].mxu1 }
 0x16c   :  { %v364_v61 = vpop.f32.mrb[8].mxu1 }
 0x16d   :  { %v365_v62 = vadd.f32 %v5059_v60, %v364_v61  ;;  %v4034_v63 = vpop.f32.mrb[9].mxu1  ;;  %v286_v61 = vadd.f32 %v5068_v7, %v5052_v56 }
 0x16e   :  { %v367_v1 = vpop.f32.mrb[10].mxu1 }
 0x16f   :  { %v506_v2 = vcombine.high %v365_v62, %v365_v62  ;;  %v4035_v3 = vpop.f32.mrb[11].mxu1  ;;  %v368_v5 = vadd.f32 %v5059_v60, %v367_v1 }
 0x171   :  { %v545_v4 = vcombine.low %v365_v62, %v506_v2  ;;  %v507_v9 = vcombine.high %v368_v5, %v368_v5  ;;  %v5134_v2 = vpack.c.bf16 %v286_v61, %v286_v61 }
 0x173   :  { %v5063_v6 = vpack.c.bf16 %v368_v5, %v545_v4  ;;  %v289_v4 = vadd.f32 %v5068_v7, %v5054_v58  ;;  %v3786_v5 = vld [vmem:[#allocation10] ss:$0 sm:$0xff] }
 0x174   :  { %v372_v8 = vpop.f32.mrb[12].mxu1 }
 0x175   :  { %v373_v10 = vadd.f32 %v5059_v60, %v372_v8  ;;  %v4038_v11 = vpop.f32.mrb[13].mxu1  ;;  %v586_v12 = vsel %vm581_vm2, %v5063_v6, 0  ;;  %v5145_v56 = vpack.c.bf16 %v289_v4, %v289_v4  ;;  %v459_v8 = vpop.f32.mrb[4].mxu0 }
 0x176   :  { %v375_v14 = vpop.f32.mrb[14].mxu1  ;;  %4077 = vmatpush3.bf16.xpose.msra.mxu1 %v586_v12  ;;  %v4058_v58 = vpop.f32.mrb[5].mxu0 }
 0x177   :  { %v508_v15 = vcombine.high %v373_v10, %v373_v10  ;;  %v546_v16 = vcombine.low %v507_v9, %v373_v10  ;;  %v376_v17 = vadd.f32 %v5059_v60, %v375_v14  ;;  %v4039_v18 = vpop.f32.mrb[15].mxu1  ;;  %4082 = vmatprep.subr.bf16.mxu1 %v4797_v0  ;;  %v460_v9 = vadd.f32 %v3786_v5, %v459_v8  ;;  %v462_v7 = vpop.f32.mrb[6].mxu0 }
 0x178   :  { %v463_v11 = vadd.f32 %v3786_v5, %v462_v7  ;;  %v4059_v12 = vpop.f32.mrb[7].mxu0 }
 0x179   :  { %v5076_v19 = vpack.c.bf16 %v508_v15, %v546_v16  ;;  %v509_v20 = vcombine.high %v376_v17, %v376_v17  ;;  %v527_v10 = vcombine.high %v460_v9, %v460_v9  ;;  %v467_v16 = vpop.f32.mrb[8].mxu0 }
 0x17a   :  { %v528_v14 = vcombine.high %v463_v11, %v463_v11  ;;  %v4062_v18 = vpop.f32.mrb[9].mxu0 }
 0x17b   :  { %v547_v23 = vcombine.low %v376_v17, %v509_v20  ;;  %v632_v26 = vsel %vm581_vm2, %v5076_v19, 0  ;;  %v563_v13 = vcombine.low %v460_v9, %v527_v10  ;;  %v468_v17 = vadd.f32 %v3786_v5, %v467_v16 }
 0x17c   :  { %v380_v22 = vpop.f32.mrb[16].mxu1 }
 0x17d   :  { %v381_v24 = vadd.f32 %v5059_v60, %v380_v22  ;;  %v4042_v25 = vpop.f32.mrb[17].mxu1  ;;  %4079 = vmatmul.mubr.msk.bf16.vlgmr.msra.gmra.mrb[28].mxu1 %vm581_vm2, %v5078_v21  ;;  %v5151_v15 = vpack.c.bf16 %v463_v11, %v563_v13  ;;  %v529_v20 = vcombine.high %v468_v17, %v468_v17  ;;  %v564_v22 = vcombine.low %v528_v14, %v468_v17 }
 0x17e   :  { %v383_v27 = vpop.f32.mrb[18].mxu1  ;;  %4083 = vmatpush3.bf16.xpose.msra.mxu1 %v632_v26  ;;  %4084 = vmatprep.mubr.msk.bf16.mxu1 %vm4798_vm0, %v4797_v0 }
 0x17f   :  { %v510_v28 = vcombine.high %v381_v24, %v381_v24  ;;  %v5087_v29 = vpack.c.bf16 %v381_v24, %v547_v23  ;;  %v384_v30 = vadd.f32 %v5059_v60, %v383_v27  ;;  %v4043_v32 = vpop.f32.mrb[19].mxu1  ;;  %4088 = vmatprep.subr.bf16.mxu1 %v4797_v0  ;;  %v936_v23 = vsel %vm934_vm3, %v5151_v15, 0  ;;  %v470_v24 = vpop.f32.mrb[10].mxu0 }
 0x180   :  { %v5155_v25 = vpack.c.bf16 %v529_v20, %v564_v22  ;;  %v471_v26 = vadd.f32 %v3786_v5, %v470_v24  ;;  %v4063_v27 = vpop.f32.mrb[11].mxu0 }
 0x181   :  { %v511_v33 = vcombine.high %v384_v30, %v384_v30  ;;  %v548_v34 = vcombine.low %v510_v28, %v384_v30  ;;  %v678_v39 = vsel %vm581_vm2, %v5087_v29, 0  ;;  %v475_v31 = vpop.f32.mrb[12].mxu0 }
 0x182   :  { %v530_v28 = vcombine.high %v471_v26, %v471_v26  ;;  %v982_v30 = vsel %vm934_vm3, %v5155_v25, 0 }
 0x183   :  { %v5092_v35 = vpack.c.bf16 %v511_v33, %v548_v34  ;;  %v476_v33 = vadd.f32 %v3786_v5, %v475_v31  ;;  %v4066_v34 = vpop.f32.mrb[13].mxu0 }
 0x184   :  { %v388_v37 = vpop.f32.mrb[20].mxu1  ;;  %v565_v32 = vcombine.low %v471_v26, %v530_v28 }
 0x185   :  { %v389_v38 = vadd.f32 %v5059_v60, %v388_v37  ;;  %4085 = vmatmul.mubr.msk.bf16.vlgmr.msra.gmra.mrb[32].mxu1 %vm581_vm2, %v5094_v36  ;;  %v724_v40 = vsel %vm581_vm2, %v5092_v35, 0  ;;  %v4046_v41 = vpop.f32.mrb[21].mxu1 }
 0x186   :  { %4089 = vmatpush3.bf16.xpose.msra.mxu1 %v678_v39  ;;  %4095 = vmatpush3.bf16.xpose.msra.mxu0 %v724_v40  ;;  %v391_v43 = vpop.f32.mrb[22].mxu1  ;;  %v5161_v37 = vpack.c.bf16 %v476_v33, %v565_v32  ;;  %v531_v40 = vcombine.high %v476_v33, %v476_v33 }
 0x187   :  { %v512_v45 = vcombine.high %v389_v38, %v389_v38  ;;  %v392_v46 = vadd.f32 %v5059_v60, %v391_v43  ;;  %v4047_v47 = vpop.f32.mrb[23].mxu1  ;;  %4090 = vmatprep.mubr.msk.bf16.mxu1 %vm4798_vm0, %v4797_v0  ;;  %4100 = vmatprep.subr.bf16.mxu1 %v4797_v0 }
 0x188   :  { %4106 = vmatprep.subr.bf16.mxu0 %v4797_v0 }
 0x189   :  { %v549_v49 = vcombine.low %v389_v38, %v512_v45  ;;  %v513_v52 = vcombine.high %v392_v46, %v392_v46  ;;  %v478_v38 = vpop.f32.mrb[14].mxu0 }
 0x18a   :  { %v4067_v39 = vpop.f32.mrb[15].mxu0  ;;  %v479_v41 = vadd.f32 %v3786_v5, %v478_v38 }
 0x18b   :  { %v5116_v53 = vpack.c.bf16 %v392_v46, %v549_v49  ;;  %v483_v44 = vpop.f32.mrb[16].mxu0 }
 0x18c   :  { %v396_v50 = vpop.f32.mrb[24].mxu1  ;;  %v532_v42 = vcombine.high %v479_v41, %v479_v41  ;;  %v566_v43 = vcombine.low %v531_v40, %v479_v41  ;;  %v484_v46 = vadd.f32 %v3786_v5, %v483_v44  ;;  %v4070_v47 = vpop.f32.mrb[17].mxu0 }
 0x18d   :  { %v397_v54 = vadd.f32 %v5059_v60, %v396_v50  ;;  %4091 = vmatmul.mubr.msk.bf16.vlgmr.msra.gmra.mrb[36].mxu1 %vm581_vm2, %v5112_v51  ;;  %4097 = vmatmul.mubr.msk.bf16.vlgmr.msra.gmra.mrb[24].mxu0 %vm581_vm2, %v5114_v48  ;;  %v770_v55 = vsel %vm581_vm2, %v5116_v53, 0  ;;  %v4050_v57 = vpop.f32.mrb[25].mxu1 }
 0x18e   :  { %4101 = vmatpush3.bf16.xpose.msra.mxu1 %v770_v55  ;;  %4102 = vmatprep.mubr.msk.bf16.mxu1 %vm4798_vm0, %v4797_v0  ;;  %v399_v59 = vpop.f32.mrb[26].mxu1  ;;  %v5163_v45 = vpack.c.bf16 %v532_v42, %v566_v43  ;;  %v533_v49 = vcombine.high %v484_v46, %v484_v46 }
 0x18f   :  { %v514_v62 = vcombine.high %v397_v54, %v397_v54  ;;  %v550_v60 = vcombine.low %v513_v52, %v397_v54  ;;  %4108 = vmatprep.mubr.msk.bf16.mxu0 %vm4798_vm0, %v4797_v0  ;;  %v4051_v63 = vpop.f32.mrb[27].mxu1  ;;  %4112 = vmatprep.subr.bf16.mxu1 %v4797_v0  ;;  %v486_v52 = vpop.f32.mrb[18].mxu0 }
 0x190   :  { %v4071_v50 = vpop.f32.mrb[19].mxu0  ;;  %v567_v54 = vcombine.low %v484_v46, %v533_v49  ;;  %v487_v55 = vadd.f32 %v3786_v5, %v486_v52 }
 0x191   :  { %v5132_v1 = vpack.c.bf16 %v514_v62, %v550_v60  ;;  %v491_v57 = vpop.f32.mrb[20].mxu0 }
 0x192   :  { %v534_v59 = vcombine.high %v487_v55, %v487_v55  ;;  %v5165_v61 = vpack.c.bf16 %v487_v55, %v567_v54  ;;  %v492_v62 = vadd.f32 %v3786_v5, %v491_v57  ;;  %v4074_v60 = vpop.f32.mrb[21].mxu0 }
 0x193   :  { %v816_v3 = vsel %vm581_vm2, %v5132_v1, 0  ;;  %v494_v63 = vpop.f32.mrb[22].mxu0 }
 0x194   :  { %4107 = vmatpush3.bf16.xpose.msra.mxu0 %v816_v3  ;;  %v535_v3 = vcombine.high %v492_v62, %v492_v62  ;;  %v568_v4 = vcombine.low %v534_v59, %v492_v62  ;;  %v4075_v8 = vpop.f32.mrb[23].mxu0 }
 0x195   :  { %4103 = vmatmul.mubr.msk.bf16.vlgmr.msra.gmra.mrb[40].mxu1 %vm581_vm2, %v5134_v2  ;;  %4118 = vmatprep.subr.bf16.mxu0 %v4797_v0 }
 0x196   :  { %4114 = vmatprep.mubr.msk.bf16.mxu1 %vm4798_vm0, %v4797_v0  ;;  %4113 = vmatpush3.bf16.msra.mxu1 %v936_v23  ;;  %v5167_v9 = vpack.c.bf16 %v535_v3, %v568_v4 }
 0x197   :  { %4124 = vmatprep.subr.bf16.mxu1 %v4797_v0 }
 0x19b   :  { %4109 = vmatmul.mubr.msk.bf16.vlgmr.msra.gmra.mrb[28].mxu0 %vm581_vm2, %v5145_v56 }
 0x19c   :  { %4120 = vmatprep.mubr.msk.bf16.mxu0 %vm4798_vm0, %v4797_v0  ;;  %4119 = vmatpush3.bf16.msra.mxu0 %v982_v30 }
 0x19d   :  { %4130 = vmatprep.subr.bf16.mxu0 %v4797_v0 }
 0x250   :  { %v622_v58 = vpop.f32.mrb[28].mxu1 }
 0x251   :  { %v859_v7 = vsel %vm858_vm4, %v622_v58, -inf  ;;  %v4080_v10 = vpop.f32.mrb[29].mxu1 }
 0x252   :  { %860 = vmax.xlane.f32.xlu0 %v859_v7  ;;  %v625_v11 = vpop.f32.mrb[30].mxu1 }
 0x253   :  { %v4081_v12 = vpop.f32.mrb[31].mxu1 }
 0x258   :  { %v668_v13 = vpop.f32.mrb[32].mxu1 }
 0x259   :  { %v862_v14 = vsel %vm858_vm4, %v668_v13, -inf  ;;  %v4086_v16 = vpop.f32.mrb[33].mxu1 }
 0x25a   :  { %863 = vmax.xlane.f32.xlu0 %v862_v14  ;;  %v671_v5 = vpop.f32.mrb[34].mxu1 }
 0x25b   :  { %v4087_v17 = vpop.f32.mrb[35].mxu1 }
 0x260   :  { %v714_v18 = vpop.f32.mrb[36].mxu1  ;;  %v760_v20 = vpop.f32.mrb[24].mxu0 }
 0x261   :  { %v4092_v22 = vpop.f32.mrb[37].mxu1  ;;  %v4098_v23 = vpop.f32.mrb[25].mxu0  ;;  %v865_v24 = vsel %vm858_vm4, %v714_v18, -inf  ;;  %v868_v31 = vsel %vm858_vm4, %v760_v20, -inf }
 0x262   :  { %866 = vmax.xlane.f32.xlu1 %v865_v24  ;;  %v717_v26 = vpop.f32.mrb[38].mxu1  ;;  %v763_v27 = vpop.f32.mrb[26].mxu0 }
 0x263   :  { %v4093_v28 = vpop.f32.mrb[39].mxu1  ;;  %v4099_v30 = vpop.f32.mrb[27].mxu0 }
 0x266   :  { %869 = vmax.xlane.f32.xlu1 %v868_v31 }
 0x268   :  { %v806_v32 = vpop.f32.mrb[40].mxu1 }
 0x269   :  { %v4104_v33 = vpop.f32.mrb[41].mxu1  ;;  %v871_v34 = vsel %vm858_vm4, %v806_v32, -inf }
 0x26a   :  { %872 = vmax.xlane.f32.xlu0 %v871_v34  ;;  %v809_v38 = vpop.f32.mrb[42].mxu1  ;;  %v1028_v33 = vsel %vm934_vm3, %v5161_v37, 0 }
 0x26b   :  { %v4105_v39 = vpop.f32.mrb[43].mxu1 }
 0x26e   :  { %v852_v40 = vpop.f32.mrb[28].mxu0 }
 0x26f   :  { %v4110_v41 = vpop.f32.mrb[29].mxu0  ;;  %v874_v42 = vsel %vm858_vm4, %v852_v40, -inf }
 0x270   :  { %875 = vmax.xlane.f32.xlu1 %v874_v42  ;;  %v855_v43 = vpop.f32.mrb[30].mxu0  ;;  %v1074_v42 = vsel %vm934_vm3, %v5163_v45, 0 }
 0x271   :  { %v4111_v44 = vpop.f32.mrb[31].mxu0 }
 0x2df   :  { %v861_v46 = vpop.xlane.xlu0 %860 }
 0x2e0   :  { %v877_v47 = vsub.f32 %v622_v58, %v861_v46 }
 0x2e2   :  { %v883_v49 = vmul.f32 1.442695, %v877_v47 }
 0x2e4   :  { %4498 = vpow2.f32 %v883_v49 }
 0x2e7   :  { %v864_v52 = vpop.xlane.xlu0 %863 }
 0x2e8   :  { %v878_v50 = vsub.f32 %v668_v13, %v864_v52  ;;  %v1120_v52 = vsel %vm934_vm3, %v5165_v61, 0 }
 0x2ea   :  { %v885_v54 = vmul.f32 1.442695, %v878_v50 }
 0x2ec   :  { %4500 = vpow2.f32 %v885_v54 }
 0x2ee   :  { %v4499_v55 = vpop.eup %4498 }
 0x2ef   :  { %v867_v57 = vpop.xlane.xlu1 %866  ;;  %v895_v59 = vsel %vm858_vm4, %v4499_v55, 0.0 }
 0x2f0   :  { %v879_v62 = vsub.f32 %v714_v18, %v867_v57  ;;  %896 = vadd.xlane.f32.xlu0 %v895_v59  ;;  %v1166_v59 = vsel %vm934_vm3, %v5167_v9, 0 }
 0x2f2   :  { %v887_v60 = vmul.f32 1.442695, %v879_v62 }
 0x2f3   :  { %v870_v63 = vpop.xlane.xlu1 %869 }
 0x2f4   :  { %4502 = vpow2.f32 %v887_v60  ;;  %v880_v3 = vsub.f32 %v760_v20, %v870_v63 }
 0x2f6   :  { %v4501_v4 = vpop.eup %4500  ;;  %v889_v8 = vmul.f32 1.442695, %v880_v3 }
 0x2f7   :  { %v873_v7 = vpop.xlane.xlu0 %872  ;;  %v898_v58 = vsel %vm858_vm4, %v4501_v4, 0.0 }
 0x2f8   :  { %4504 = vpow2.f32 %v889_v8  ;;  %v881_v10 = vsub.f32 %v806_v32, %v873_v7  ;;  %899 = vadd.xlane.f32.xlu1 %v898_v58 }
 0x2fa   :  { %v891_v11 = vmul.f32 1.442695, %v881_v10 }
 0x2fc   :  { %4506 = vpow2.f32 %v891_v11 }
 0x2fd   :  { %v876_v18 = vpop.xlane.xlu1 %875 }
 0x2fe   :  { %v4503_v12 = vpop.eup %4502  ;;  %v882_v20 = vsub.f32 %v852_v40, %v876_v18 }
 0x2ff   :  { %v901_v13 = vsel %vm858_vm4, %v4503_v12, 0.0 }
 0x300   :  { %902 = vadd.xlane.f32.xlu0 %v901_v13  ;;  %v893_v22 = vmul.f32 1.442695, %v882_v20 }
 0x302   :  { %v4505_v14 = vpop.eup %4504  ;;  %4508 = vpow2.f32 %v893_v22 }
 0x303   :  { %v904_v16 = vsel %vm858_vm4, %v4505_v14, 0.0 }
 0x304   :  { %905 = vadd.xlane.f32.xlu1 %v904_v16 }
 0x306   :  { %v4507_v5 = vpop.eup %4506 }
 0x307   :  { %v907_v17 = vsel %vm858_vm4, %v4507_v5, 0.0 }
 0x308   :  { %908 = vadd.xlane.f32.xlu0 %v907_v17 }
 0x30c   :  { %v5194_v23 = vpop.eup %4508 }
 0x30d   :  { %v910_v24 = vsel %vm858_vm4, %v5194_v23, 0.0 }
 0x315   :  { %1268 = vrot.lane.b32.xlu1 %v5076_v19, %s4799_s3 }
 0x319   :  { %1213 = vrot.lane.b32.xlu1 %v5078_v21, %s4799_s3 }
 0x31e   :  { %1216 = vrot.lane.b32.xlu0 %v5063_v6, %s4799_s3 }
 0x322   :  { %1320 = vrot.lane.b32.xlu0 %v5087_v29, %s4799_s3 }
 0x326   :  { %1317 = vrot.lane.b32.xlu0 %v5112_v51, %s4799_s3 }
 0x32a   :  { %1424 = vrot.lane.b32.xlu0 %v5116_v53, %s4799_s3 }
 0x32e   :  { %1421 = vrot.lane.b32.xlu0 %v5134_v2, %s4799_s3 }
 0x33d   :  { %911 = vadd.xlane.f32.xlu1 %v910_v24 }
 0x34e   :  { %1265 = vrot.lane.b32.xlu1 %v5094_v36, %s4799_s3 }
 0x352   :  { %1372 = vrot.lane.b32.xlu1 %v5092_v35, %s4799_s3 }
 0x356   :  { %1369 = vrot.lane.b32.xlu1 %v5114_v48, %s4799_s3 }
 0x35a   :  { %1476 = vrot.lane.b32.xlu1 %v5132_v1, %s4799_s3 }
 0x35e   :  { %1473 = vrot.lane.b32.xlu1 %v5145_v56, %s4799_s3 }
 0x37d   :  { %v897_v26 = vpop.xlane.xlu0 %896 }
 0x37e   :  { %4510 = vrcp.f32 %v897_v26 }
 0x385   :  { %v900_v27 = vpop.xlane.xlu1 %899 }
 0x386   :  { %4512 = vrcp.f32 %v900_v27 }
 0x388   :  { %v4511_v28 = vpop.eup %4510 }
 0x389   :  { %v919_v30 = vmul.f32 %v4511_v28, %v4499_v55 }
 0x38b   :  { %v925_v31 = vpack.c.bf16 %v919_v30, %v919_v30 }
 0x38d   :  { %v903_v32 = vpop.xlane.xlu0 %902  ;;  %4115 = vmatmul.mubr.msk.bf16.vlgmr.msra.gmra.mrb[44].mxu1 %vm858_vm4, %v925_v31 }
 0x38e   :  { %4514 = vrcp.f32 %v903_v32  ;;  %4125 = vmatpush3.bf16.msra.mxu1 %v1028_v33  ;;  %4126 = vmatprep.mubr.msk.bf16.mxu1 %vm4798_vm0, %v4797_v0 }
 0x38f   :  { %4136 = vmatprep.subr.bf16.mxu1 %v4797_v0 }
 0x390   :  { %v4513_v34 = vpop.eup %4512 }
 0x391   :  { %v920_v38 = vmul.f32 %v4513_v34, %v4501_v4  ;;  %v906_v39 = vpop.xlane.xlu1 %905 }
 0x392   :  { %4516 = vrcp.f32 %v906_v39 }
 0x393   :  { %v926_v40 = vpack.c.bf16 %v920_v38, %v920_v38 }
 0x395   :  { %v909_v41 = vpop.xlane.xlu0 %908  ;;  %4121 = vmatmul.mubr.msk.bf16.vlgmr.msra.gmra.mrb[32].mxu0 %vm858_vm4, %v926_v40  ;;  %v1269_v63 = vpop.permute.xlu1 %1268 }
 0x396   :  { %4518 = vrcp.f32 %v909_v41  ;;  %4131 = vmatpush3.bf16.msra.mxu0 %v1074_v42  ;;  %4132 = vmatprep.mubr.msk.bf16.mxu0 %vm4798_vm0, %v4797_v0  ;;  %v1274_v17 = vsel %vm581_vm2, %v1269_v63, 0 }
 0x397   :  { %4142 = vmatprep.subr.bf16.mxu0 %v4797_v0 }
 0x398   :  { %v4515_v43 = vpop.eup %4514 }
 0x399   :  { %v921_v44 = vmul.f32 %v4515_v43, %v4503_v12  ;;  %v1217_v57 = vpop.permute.xlu0 %1216  ;;  %v1214_v4 = vpop.permute.xlu1 %1213 }
 0x39a   :  { %v1222_v60 = vsel %vm581_vm2, %v1217_v57, 0 }
 0x39b   :  { %v927_v46 = vpack.c.bf16 %v921_v44, %v921_v44 }
 0x39c   :  { %v4517_v47 = vpop.eup %4516 }
 0x39d   :  { %v922_v49 = vmul.f32 %v4517_v47, %v4505_v14  ;;  %4127 = vmatmul.mubr.msk.bf16.vlgmr.msra.gmra.mrb[48].mxu1 %vm858_vm4, %v927_v46  ;;  %v1321_v3 = vpop.permute.xlu0 %1320 }
 0x39e   :  { %4137 = vmatpush3.bf16.msra.mxu1 %v1120_v52  ;;  %4138 = vmatprep.mubr.msk.bf16.mxu1 %vm4798_vm0, %v4797_v0  ;;  %v1326_v7 = vsel %vm581_vm2, %v1321_v3, 0 }
 0x39f   :  { %v928_v50 = vpack.c.bf16 %v922_v49, %v922_v49  ;;  %4148 = vmatprep.subr.bf16.mxu1 %v4797_v0 }
 0x3a0   :  { %v4519_v54 = vpop.eup %4518 }
 0x3a1   :  { %v923_v55 = vmul.f32 %v4519_v54, %v4507_v5  ;;  %4133 = vmatmul.mubr.msk.bf16.vlgmr.msra.gmra.mrb[36].mxu0 %vm858_vm4, %v928_v50  ;;  %v1318_v8 = vpop.permute.xlu0 %1317 }
 0x3a2   :  { %4143 = vmatpush3.bf16.msra.mxu0 %v1166_v59  ;;  %4144 = vmatprep.mubr.msk.bf16.mxu0 %vm4798_vm0, %v4797_v0 }
 0x3a3   :  { %v929_v62 = vpack.c.bf16 %v923_v55, %v923_v55  ;;  %4154 = vmatprep.subr.bf16.mxu0 %v4797_v0 }
 0x3a5   :  { %4139 = vmatmul.mubr.msk.bf16.vlgmr.msra.gmra.mrb[52].mxu1 %vm858_vm4, %v929_v62  ;;  %v1425_v58 = vpop.permute.xlu0 %1424 }
 0x3a6   :  { %4150 = vmatprep.mubr.msk.bf16.mxu1 %vm4798_vm0, %v4797_v0  ;;  %v1430_v10 = vsel %vm581_vm2, %v1425_v58, 0 }
 0x3a7   :  { %4149 = vmatpush3.bf16.xpose.msra.mxu1 %v1222_v60 }
 0x3a8   :  { %4160 = vmatprep.subr.bf16.mxu1 %v4797_v0 }
 0x3a9   :  { %v1422_v11 = vpop.permute.xlu0 %1421 }
 0x3ae   :  { %4151 = vmatmul.mubr.msk.bf16.vlgmr.msra.gmra.mrb[56].mxu1 %vm581_vm2, %v1214_v4 }
 0x3af   :  { %4161 = vmatpush3.bf16.xpose.msra.mxu1 %v1326_v7  ;;  %4162 = vmatprep.mubr.msk.bf16.mxu1 %vm4798_vm0, %v4797_v0 }
 0x3b0   :  { %4172 = vmatprep.subr.bf16.mxu1 %v4797_v0 }
 0x3b6   :  { %4163 = vmatmul.mubr.msk.bf16.vlgmr.msra.gmra.mrb[60].mxu1 %vm581_vm2, %v1318_v8 }
 0x3b7   :  { %4173 = vmatpush3.bf16.xpose.msra.mxu1 %v1430_v10  ;;  %4174 = vmatprep.mubr.msk.bf16.mxu1 %vm4798_vm0, %v4797_v0 }
 0x3b8   :  { %4184 = vmatprep.subr.bf16.mxu1 %v4797_v0 }
 0x3be   :  { %4175 = vmatmul.mubr.msk.bf16.vlgmr.msra.gmra.mrb[64].mxu1 %vm581_vm2, %v1422_v11 }
 0x3bf   :  { %4186 = vmatprep.mubr.msk.bf16.mxu1 %vm4798_vm0, %v4797_v0 }
 0x3ca   :  { %v912_v12 = vpop.xlane.xlu1 %911 }
 0x3cb   :  { %4520 = vrcp.f32 %v912_v12 }
 0x3ce   :  { %v1266_v14 = vpop.permute.xlu1 %1265 }
 0x3d2   :  { %v1373_v18 = vpop.permute.xlu1 %1372 }
 0x3d3   :  { %v1378_v22 = vsel %vm581_vm2, %v1373_v18, 0 }
 0x3d5   :  { %v4521_v13 = vpop.eup %4520 }
 0x3d6   :  { %v924_v16 = vmul.f32 %v4521_v13, %v5194_v23  ;;  %v1370_v20 = vpop.permute.xlu1 %1369 }
 0x3d8   :  { %v930_v5 = vpack.c.bf16 %v924_v16, %v924_v16 }
 0x3da   :  { %4145 = vmatmul.mubr.msk.bf16.vlgmr.msra.gmra.mrb[40].mxu0 %vm858_vm4, %v930_v5  ;;  %v1477_v23 = vpop.permute.xlu1 %1476 }
 0x3db   :  { %4155 = vmatpush3.bf16.xpose.msra.mxu0 %v1274_v17  ;;  %4156 = vmatprep.mubr.msk.bf16.mxu0 %vm4798_vm0, %v4797_v0  ;;  %v1482_v24 = vsel %vm581_vm2, %v1477_v23, 0 }
 0x3dc   :  { %4166 = vmatprep.subr.bf16.mxu0 %v4797_v0 }
 0x3de   :  { %v1474_v26 = vpop.permute.xlu1 %1473 }
 0x3e2   :  { %4157 = vmatmul.mubr.msk.bf16.vlgmr.msra.gmra.mrb[44].mxu0 %vm581_vm2, %v1266_v14 }
 0x3e3   :  { %4167 = vmatpush3.bf16.xpose.msra.mxu0 %v1378_v22  ;;  %4168 = vmatprep.mubr.msk.bf16.mxu0 %vm4798_vm0, %v4797_v0 }
 0x3e4   :  { %4178 = vmatprep.subr.bf16.mxu0 %v4797_v0 }
 0x3ea   :  { %4169 = vmatmul.mubr.msk.bf16.vlgmr.msra.gmra.mrb[48].mxu0 %vm581_vm2, %v1370_v20 }
 0x3eb   :  { %4179 = vmatpush3.bf16.xpose.msra.mxu0 %v1482_v24  ;;  %4180 = vmatprep.mubr.msk.bf16.mxu0 %vm4798_vm0, %v4797_v0 }
 0x3ec   :  { %4190 = vmatprep.subr.bf16.mxu0 %v4797_v0 }
 0x3f2   :  { %4181 = vmatmul.mubr.msk.bf16.vlgmr.msra.gmra.mrb[52].mxu0 %vm581_vm2, %v1474_v26 }
 0x3f3   :  { %4192 = vmatprep.mubr.msk.bf16.mxu0 %vm4798_vm0, %v4797_v0 }
 0x460   :  { %v5269_v27 = vpop.f32.mrb[44].mxu1 }
 0x461   :  { %v4116_v28 = vpop.f32.mrb[45].mxu1 }
 0x462   :  { %v975_v30 = vpop.f32.mrb[46].mxu1 }
 0x463   :  { %v4117_v31 = vpop.f32.mrb[47].mxu1 }
 0x468   :  { %v5271_v32 = vpop.f32.mrb[32].mxu0 }
 0x469   :  { %v1208_v33 = vpack.c.bf16 %v5271_v32, %v5269_v27  ;;  %v4122_v34 = vpop.f32.mrb[33].mxu0 }
 0x46a   :  { %v1021_v38 = vpop.f32.mrb[34].mxu0 }
 0x46b   :  { %v4123_v39 = vpop.f32.mrb[35].mxu0 }
 0x470   :  { %v5275_v40 = vpop.f32.mrb[48].mxu1 }
 0x471   :  { %v4128_v41 = vpop.f32.mrb[49].mxu1 }
 0x472   :  { %v1067_v42 = vpop.f32.mrb[50].mxu1 }
 0x473   :  { %v4129_v43 = vpop.f32.mrb[51].mxu1 }
 0x474   :  { %v5277_v44 = vpop.f32.mrb[36].mxu0 }
 0x475   :  { %v1209_v46 = vpack.c.bf16 %v5277_v44, %v5275_v40  ;;  %v4134_v47 = vpop.f32.mrb[37].mxu0 }
 0x476   :  { %v1113_v49 = vpop.f32.mrb[38].mxu0 }
 0x477   :  { %v4135_v52 = vpop.f32.mrb[39].mxu0 }
 0x478   :  { %v5281_v50 = vpop.f32.mrb[52].mxu1 }
 0x479   :  { %v4140_v54 = vpop.f32.mrb[53].mxu1 }
 0x47a   :  { %v1159_v55 = vpop.f32.mrb[54].mxu1 }
 0x47b   :  { %v4141_v57 = vpop.f32.mrb[55].mxu1 }
 0x481   :  { %v1258_v59 = vpop.f32.mrb[56].mxu1 }
 0x482   :  { %v4152_v62 = vpop.f32.mrb[57].mxu1  ;;  %v1524_v60 = vsel %vm858_vm4, %v1258_v59, -inf }
 0x483   :  { %1525 = vmax.xlane.f32.xlu0 %v1524_v60  ;;  %v1261_v63 = vpop.f32.mrb[58].mxu1 }
 0x484   :  { %v4153_v3 = vpop.f32.mrb[59].mxu1 }
 0x489   :  { %v1362_v4 = vpop.f32.mrb[60].mxu1 }
 0x48a   :  { %v4164_v8 = vpop.f32.mrb[61].mxu1  ;;  %v1530_v7 = vsel %vm858_vm4, %v1362_v4, -inf }
 0x48b   :  { %1531 = vmax.xlane.f32.xlu0 %v1530_v7  ;;  %v1365_v58 = vpop.f32.mrb[62].mxu1 }
 0x48c   :  { %v4165_v10 = vpop.f32.mrb[63].mxu1 }
 0x491   :  { %v1466_v11 = vpop.f32.mrb[64].mxu1 }
 0x492   :  { %v4176_v12 = vpop.f32.mrb[65].mxu1  ;;  %v1536_v41 = vsel %vm858_vm4, %v1466_v11, -inf }
 0x493   :  { %v1469_v13 = vpop.f32.mrb[66].mxu1 }
 0x494   :  { %v4177_v14 = vpop.f32.mrb[67].mxu1 }
 0x4ad   :  { %v5285_v16 = vpop.f32.mrb[40].mxu0 }
 0x4ae   :  { %v1210_v5 = vpack.c.bf16 %v5285_v16, %v5281_v50  ;;  %v4146_v17 = vpop.f32.mrb[41].mxu0 }
 0x4af   :  { %v1205_v18 = vpop.f32.mrb[42].mxu0 }
 0x4b0   :  { %v4147_v20 = vpop.f32.mrb[43].mxu0 }
 0x4b5   :  { %v1310_v22 = vpop.f32.mrb[44].mxu0 }
 0x4b6   :  { %v4158_v23 = vpop.f32.mrb[45].mxu0  ;;  %v1527_v24 = vsel %vm858_vm4, %v1310_v22, -inf }
 0x4b7   :  { %1528 = vmax.xlane.f32.xlu1 %v1527_v24  ;;  %v1313_v26 = vpop.f32.mrb[46].mxu0 }
 0x4b8   :  { %v4159_v28 = vpop.f32.mrb[47].mxu0 }
 0x4bd   :  { %v1414_v30 = vpop.f32.mrb[48].mxu0 }
 0x4be   :  { %v4170_v31 = vpop.f32.mrb[49].mxu0  ;;  %v1533_v34 = vsel %vm858_vm4, %v1414_v30, -inf }
 0x4bf   :  { %1534 = vmax.xlane.f32.xlu0 %v1533_v34  ;;  %v1417_v38 = vpop.f32.mrb[50].mxu0 }
 0x4c0   :  { %v4171_v39 = vpop.f32.mrb[51].mxu0 }
 0x4c3   :  { %1537 = vmax.xlane.f32.xlu0 %v1536_v41 }
 0x4c5   :  { %v1518_v42 = vpop.f32.mrb[52].mxu0 }
 0x4c6   :  { %v4182_v43 = vpop.f32.mrb[53].mxu0  ;;  %v1539_v47 = vsel %vm858_vm4, %v1518_v42, -inf }
 0x4c7   :  { %1540 = vmax.xlane.f32.xlu1 %v1539_v47  ;;  %v1521_v49 = vpop.f32.mrb[54].mxu0 }
 0x4c8   :  { %v4183_v52 = vpop.f32.mrb[55].mxu0 }
 0x4d8   :  { %1646 = vrot.lane.b32.xlu1 %v5155_v25, %s4799_s3 }
 0x4dc   :  { %1695 = vrot.lane.b32.xlu1 %v5161_v37, %s4799_s3 }
 0x4e0   :  { %1744 = vrot.lane.b32.xlu1 %v5163_v45, %s4799_s3 }
 0x510   :  { %v1526_v54 = vpop.xlane.xlu0 %1525 }
 0x511   :  { %v1542_v55 = vsub.f32 %v1258_v59, %v1526_v54 }
 0x513   :  { %v1548_v57 = vmul.f32 1.442695, %v1542_v55 }
 0x515   :  { %4522 = vpow2.f32 %v1548_v57 }
 0x518   :  { %v1532_v63 = vpop.xlane.xlu0 %1531 }
 0x519   :  { %v1544_v3 = vsub.f32 %v1362_v4, %v1532_v63 }
 0x51b   :  { %v1552_v8 = vmul.f32 1.442695, %v1544_v3 }
 0x51d   :  { %4524 = vpow2.f32 %v1552_v8 }
 0x51f   :  { %v5299_v62 = vpop.eup %4522 }
 0x520   :  { %v1560_v60 = vsel %vm858_vm4, %v5299_v62, 0.0 }
 0x521   :  { %1561 = vadd.xlane.f32.xlu0 %v1560_v60 }
 0x527   :  { %v5305_v18 = vpop.eup %4524 }
 0x528   :  { %v1566_v26 = vsel %vm858_vm4, %v5305_v18, 0.0 }
 0x537   :  { %1597 = vrot.lane.b32.xlu0 %v5151_v15, %s4799_s3 }
 0x544   :  { %v1529_v7 = vpop.xlane.xlu1 %1528 }
 0x545   :  { %v1543_v58 = vsub.f32 %v1310_v22, %v1529_v7 }
 0x547   :  { %v1550_v10 = vmul.f32 1.442695, %v1543_v58 }
 0x549   :  { %4526 = vpow2.f32 %v1550_v10 }
 0x54c   :  { %v1535_v59 = vpop.xlane.xlu0 %1534 }
 0x54d   :  { %v1545_v12 = vsub.f32 %v1414_v30, %v1535_v59 }
 0x54f   :  { %v1554_v13 = vmul.f32 1.442695, %v1545_v12 }
 0x550   :  { %v1538_v14 = vpop.xlane.xlu0 %1537 }
 0x551   :  { %4528 = vpow2.f32 %v1554_v13  ;;  %v1546_v17 = vsub.f32 %v1466_v11, %v1538_v14 }
 0x553   :  { %v5307_v20 = vpop.eup %4526  ;;  %v1556_v23 = vmul.f32 1.442695, %v1546_v17 }
 0x554   :  { %v1541_v24 = vpop.xlane.xlu1 %1540  ;;  %v1563_v4 = vsel %vm858_vm4, %v5307_v20, 0.0 }
 0x555   :  { %4530 = vpow2.f32 %v1556_v23  ;;  %v1547_v22 = vsub.f32 %v1518_v42, %v1541_v24  ;;  %1564 = vadd.xlane.f32.xlu1 %v1563_v4 }
 0x556   :  { %1567 = vadd.xlane.f32.xlu0 %v1566_v26 }
 0x557   :  { %v1558_v28 = vmul.f32 1.442695, %v1547_v22 }
 0x558   :  { %v1647_v30 = vpop.permute.xlu1 %1646 }
 0x559   :  { %4532 = vpow2.f32 %v1558_v28  ;;  %v1652_v11 = vsel %vm934_vm3, %v1647_v30, 0 }
 0x55a   :  { %4191 = vmatpush3.bf16.msra.mxu0 %v1652_v11 }
 0x55b   :  { %v5314_v31 = vpop.eup %4528  ;;  %4202 = vmatprep.subr.bf16.mxu0 %v4797_v0 }
 0x55c   :  { %v1569_v34 = vsel %vm858_vm4, %v5314_v31, 0.0  ;;  %v1696_v55 = vpop.permute.xlu1 %1695 }
 0x55d   :  { %1570 = vadd.xlane.f32.xlu1 %v1569_v34  ;;  %v1701_v60 = vsel %vm934_vm3, %v1696_v55, 0 }
 0x55f   :  { %v5319_v38 = vpop.eup %4530 }
 0x560   :  { %v1572_v39 = vsel %vm858_vm4, %v5319_v38, 0.0  ;;  %v1745_v63 = vpop.permute.xlu1 %1744 }
 0x561   :  { %1573 = vadd.xlane.f32.xlu0 %v1572_v39  ;;  %v1750_v17 = vsel %vm934_vm3, %v1745_v63, 0 }
 0x563   :  { %v5323_v41 = vpop.eup %4532 }
 0x564   :  { %v1575_v42 = vsel %vm858_vm4, %v5323_v41, 0.0 }
 0x565   :  { %1576 = vadd.xlane.f32.xlu1 %v1575_v42 }
 0x576   :  { %1842 = vrot.lane.b32.xlu1 %v5167_v9, %s4799_s3 }
 0x577   :  { %1793 = vrot.lane.b32.xlu0 %v5165_v61, %s4799_s3 }
 0x57a   :  { %2086 = vrot.lane.b32.xlu1 %v5076_v19, %s4800_s5 }
 0x57b   :  { %2036 = vrot.lane.b32.xlu0 %v5063_v6, %s4800_s5 }
 0x57e   :  { %2084 = vrot.lane.b32.xlu1 %v5094_v36, %s4800_s5 }
 0x57f   :  { %2034 = vrot.lane.b32.xlu0 %v5078_v21, %s4800_s5 }
 0x582   :  { %2186 = vrot.lane.b32.xlu1 %v5092_v35, %s4800_s5 }
 0x583   :  { %2136 = vrot.lane.b32.xlu0 %v5087_v29, %s4800_s5 }
 0x586   :  { %2184 = vrot.lane.b32.xlu1 %v5114_v48, %s4800_s5 }
 0x587   :  { %2134 = vrot.lane.b32.xlu0 %v5112_v51, %s4800_s5 }
 0x58a   :  { %2286 = vrot.lane.b32.xlu1 %v5132_v1, %s4800_s5 }
 0x58b   :  { %2236 = vrot.lane.b32.xlu0 %v5116_v53, %s4800_s5 }
 0x58e   :  { %2284 = vrot.lane.b32.xlu1 %v5145_v56, %s4800_s5 }
 0x58f   :  { %2234 = vrot.lane.b32.xlu0 %v5134_v2, %s4800_s5 }
 0x5ae   :  { %v1562_v43 = vpop.xlane.xlu0 %1561 }
 0x5af   :  { %4534 = vrcp.f32 %v1562_v43 }
 0x5b2   :  { %v1598_v47 = vpop.permute.xlu0 %1597 }
 0x5b3   :  { %v1603_v49 = vsel %vm934_vm3, %v1598_v47, 0 }
 0x5b4   :  { %4185 = vmatpush3.bf16.msra.mxu1 %v1603_v49  ;;  %v1894_v49 = vld [vmem:[#allocation11 + $0x4] sm:$0xf] }
 0x5b5   :  { %4196 = vmatprep.subr.bf16.mxu1 %v4797_v0  ;;  %v1906_v32 = vsel %vm1904_vm5, %v1894_v49, 0 }
 0x5b9   :  { %v4535_v52 = vpop.eup %4534 }
 0x5ba   :  { %v1584_v54 = vmul.f32 %v4535_v52, %v5299_v62 }
 0x5bc   :  { %v1590_v57 = vpack.c.bf16 %v1584_v54, %v1584_v54 }
 0x5be   :  { %4187 = vmatmul.mubr.msk.bf16.vlgmr.msra.gmra.mrb[68].mxu1 %vm858_vm4, %v1590_v57 }
 0x5bf   :  { %4197 = vmatpush3.bf16.msra.mxu1 %v1701_v60  ;;  %4198 = vmatprep.mubr.msk.bf16.mxu1 %vm4798_vm0, %v4797_v0 }
 0x5c0   :  { %4208 = vmatprep.subr.bf16.mxu1 %v4797_v0 }
 0x5e2   :  { %v1565_v3 = vpop.xlane.xlu1 %1564 }
 0x5e3   :  { %v1568_v8 = vpop.xlane.xlu0 %1567  ;;  %4536 = vrcp.f32 %v1565_v3 }
 0x5e4   :  { %4538 = vrcp.f32 %v1568_v8 }
 0x5ea   :  { %v1571_v7 = vpop.xlane.xlu1 %1570 }
 0x5eb   :  { %4540 = vrcp.f32 %v1571_v7 }
 0x5ed   :  { %v4537_v62 = vpop.eup %4536 }
 0x5ee   :  { %v4539_v58 = vpop.eup %4538  ;;  %v1585_v10 = vmul.f32 %v4537_v62, %v5307_v20  ;;  %v1574_v59 = vpop.xlane.xlu0 %1573 }
 0x5ef   :  { %v1586_v12 = vmul.f32 %v4539_v58, %v5305_v18  ;;  %4542 = vrcp.f32 %v1574_v59 }
 0x5f0   :  { %v1591_v13 = vpack.c.bf16 %v1585_v10, %v1585_v10 }
 0x5f1   :  { %v1592_v14 = vpack.c.bf16 %v1586_v12, %v1586_v12 }
 0x5f2   :  { %v1794_v23 = vpop.permute.xlu0 %1793  ;;  %4193 = vmatmul.mubr.msk.bf16.vlgmr.msra.gmra.mrb[56].mxu0 %vm858_vm4, %v1591_v13  ;;  %v1577_v24 = vpop.xlane.xlu1 %1576 }
 0x5f3   :  { %v1799_v4 = vsel %vm934_vm3, %v1794_v23, 0  ;;  %4199 = vmatmul.mubr.msk.bf16.vlgmr.msra.gmra.mrb[72].mxu1 %vm858_vm4, %v1592_v14  ;;  %4203 = vmatpush3.bf16.msra.mxu0 %v1750_v17  ;;  %4544 = vrcp.f32 %v1577_v24 }
 0x5f4   :  { %4209 = vmatpush3.bf16.msra.mxu1 %v1799_v4  ;;  %4204 = vmatprep.mubr.msk.bf16.mxu0 %vm4798_vm0, %v4797_v0 }
 0x5f5   :  { %v4541_v18 = vpop.eup %4540  ;;  %4214 = vmatprep.subr.bf16.mxu0 %v4797_v0  ;;  %4210 = vmatprep.mubr.msk.bf16.mxu1 %vm4798_vm0, %v4797_v0 }
 0x5f6   :  { %v1587_v20 = vmul.f32 %v4541_v18, %v5314_v31  ;;  %4220 = vmatprep.subr.bf16.mxu1 %v4797_v0  ;;  %v1843_v22 = vpop.permute.xlu1 %1842  ;;  %v1211_v31 = vld [vmem:[#allocation11] sm:$0xf]  ;;  %v2037_v57 = vpop.permute.xlu0 %2036 }
 0x5f7   :  { %v1848_v11 = vsel %vm934_vm3, %v1843_v22, 0  ;;  %v1975_v43 = vsel %vm1904_vm5, %v1211_v31, 0  ;;  %v2042_v58 = vsel %vm581_vm2, %v2037_v57, 0 }
 0x5f8   :  { %v1593_v26 = vpack.c.bf16 %v1587_v20, %v1587_v20 }
 0x5f9   :  { %v4543_v28 = vpop.eup %4542 }
 0x5fa   :  { %v1588_v30 = vmul.f32 %v4543_v28, %v5319_v38  ;;  %4205 = vmatmul.mubr.msk.bf16.vlgmr.msra.gmra.mrb[60].mxu0 %vm858_vm4, %v1593_v26  ;;  %v2087_v47 = vpop.permute.xlu1 %2086  ;;  %v2035_v20 = vpop.permute.xlu0 %2034 }
 0x5fb   :  { %4215 = vmatpush3.bf16.msra.mxu0 %v1848_v11  ;;  %4216 = vmatprep.mubr.msk.bf16.mxu0 %vm4798_vm0, %v4797_v0 }
 0x5fc   :  { %v1594_v34 = vpack.c.bf16 %v1588_v30, %v1588_v30  ;;  %4234 = vmatprep.subr.bf16.mxu0 %v4797_v0 }
 0x5fd   :  { %v4545_v39 = vpop.eup %4544 }
 0x5fe   :  { %v1589_v42 = vmul.f32 %v4545_v39, %v5323_v41  ;;  %4211 = vmatmul.mubr.msk.bf16.vlgmr.msra.gmra.mrb[76].mxu1 %vm858_vm4, %v1594_v34  ;;  %v2092_v41 = vsel %vm581_vm2, %v2087_v47, 0  ;;  %v2085_v27 = vpop.permute.xlu1 %2084  ;;  %v2137_v31 = vpop.permute.xlu0 %2136 }
 0x5ff   :  { %4222 = vmatprep.mubr.msk.bf16.mxu1 %vm4798_vm0, %v4797_v0  ;;  %4221 = vmatpush3.bf16.msra.mxu1 %v1906_v32 }
 0x600   :  { %v1595_v38 = vpack.c.bf16 %v1589_v42, %v1589_v42  ;;  %4248 = vmatprep.subr.bf16.mxu1 %v4797_v0 }
 0x602   :  { %4217 = vmatmul.mubr.msk.bf16.vlgmr.msra.gmra.mrb[64].mxu0 %vm858_vm4, %v1595_v38 }
 0x603   :  { %4235 = vmatpush3.bf16.msra.mxu0 %v1975_v43  ;;  %4236 = vmatprep.mubr.msk.bf16.mxu0 %vm4798_vm0, %v4797_v0  ;;  %v2135_v43 = vpop.permute.xlu0 %2134 }
 0x604   :  { %4254 = vmatprep.subr.bf16.mxu0 %v4797_v0 }
 0x60a   :  { %4237 = vmatmul.mubr.msk.bf16.vlgmr.msra.gmra.mrb[68].mxu0 %vm581_vm2, %v1208_v33  ;;  %v2187_v33 = vpop.permute.xlu1 %2186 }
 0x60b   :  { %4240 = vmatprep.mubr.msk.bf16.mxu0 %vm4798_vm0, %v4797_v0  ;;  %v2192_v44 = vsel %vm581_vm2, %v2187_v33, 0 }
 0x60c   :  { %4255 = vmatpush3.bf16.xpose.msra.mxu0 %v2092_v41  ;;  %v2142_v41 = vsel %vm581_vm2, %v2137_v31, 0 }
 0x60d   :  { %4266 = vmatprep.subr.bf16.mxu0 %v4797_v0 }
 0x60e   :  { %v2185_v40 = vpop.permute.xlu1 %2184 }
 0x612   :  { %4241 = vmatmul.mubr.msk.bf16.gmra.mrb[72].mxu0 %vm581_vm2, %v1209_v46  ;;  %v2287_v46 = vpop.permute.xlu1 %2286 }
 0x613   :  { %4244 = vmatprep.mubr.msk.bf16.mxu0 %vm4798_vm0, %v4797_v0  ;;  %v2292_v50 = vsel %vm581_vm2, %v2287_v46, 0 }
 0x616   :  { %v2285_v16 = vpop.permute.xlu1 %2284 }
 0x61a   :  { %4245 = vmatmul.mubr.msk.bf16.gmra.mrb[76].mxu0 %vm581_vm2, %v1210_v5 }
 0x61b   :  { %4256 = vmatprep.mubr.msk.bf16.mxu0 %vm4798_vm0, %v4797_v0 }
 0x622   :  { %4257 = vmatmul.mubr.msk.bf16.vlgmr.msra.gmra.mrb[80].mxu0 %vm581_vm2, %v2085_v27  ;;  %v2237_v27 = vpop.permute.xlu0 %2236 }
 0x623   :  { %4267 = vmatpush3.bf16.xpose.msra.mxu0 %v2192_v44  ;;  %4268 = vmatprep.mubr.msk.bf16.mxu0 %vm4798_vm0, %v4797_v0  ;;  %v2242_v44 = vsel %vm581_vm2, %v2237_v27, 0 }
 0x624   :  { %4278 = vmatprep.subr.bf16.mxu0 %v4797_v0 }
 0x62a   :  { %4269 = vmatmul.mubr.msk.bf16.vlgmr.msra.gmra.mrb[84].mxu0 %vm581_vm2, %v2185_v40 }
 0x62b   :  { %4279 = vmatpush3.bf16.xpose.msra.mxu0 %v2292_v50  ;;  %4280 = vmatprep.mubr.msk.bf16.mxu0 %vm4798_vm0, %v4797_v0 }
 0x62c   :  { %4290 = vmatprep.subr.bf16.mxu0 %v4797_v0 }
 0x632   :  { %4281 = vmatmul.mubr.msk.bf16.vlgmr.msra.gmra.mrb[88].mxu0 %vm581_vm2, %v2285_v16 }
 0x633   :  { %4292 = vmatprep.mubr.msk.bf16.mxu0 %vm4798_vm0, %v4797_v0 }
 0x691   :  { %v1639_v5 = vpop.f32.mrb[68].mxu1 }
 0x692   :  { %v4188_v52 = vpop.f32.mrb[69].mxu1 }
 0x693   :  { %v1642_v54 = vpop.f32.mrb[70].mxu1 }
 0x694   :  { %v4189_v55 = vpop.f32.mrb[71].mxu1 }
 0x6c5   :  { %v1688_v60 = vpop.f32.mrb[56].mxu0 }
 0x6c6   :  { %v1890_v63 = vpack.c.bf16 %v1688_v60, %v1639_v5  ;;  %v1737_v3 = vpop.f32.mrb[72].mxu1  ;;  %v4194_v8 = vpop.f32.mrb[57].mxu0 }
 0x6c7   :  { %v4200_v7 = vpop.f32.mrb[73].mxu1  ;;  %v1691_v62 = vpop.f32.mrb[58].mxu0 }
 0x6c8   :  { %v1740_v10 = vpop.f32.mrb[74].mxu1  ;;  %v4195_v59 = vpop.f32.mrb[59].mxu0  ;;  %4223 = vmatmul.mubr.msk.bf16.vlgmr.msra.gmra.mrb[80].mxu1 %vm581_vm2, %v1890_v63 }
 0x6c9   :  { %v4201_v12 = vpop.f32.mrb[75].mxu1  ;;  %4249 = vmatpush3.bf16.xpose.msra.mxu1 %v2042_v58  ;;  %4226 = vmatprep.mubr.msk.bf16.mxu1 %vm4798_vm0, %v4797_v0  ;;  %v2235_v5 = vpop.permute.xlu0 %2234 }
 0x6ca   :  { %4260 = vmatprep.subr.bf16.mxu1 %v4797_v0 }
 0x6cd   :  { %v1786_v13 = vpop.f32.mrb[60].mxu0 }
 0x6ce   :  { %v1891_v14 = vpack.c.bf16 %v1786_v13, %v1737_v3  ;;  %v4206_v17 = vpop.f32.mrb[61].mxu0 }
 0x6cf   :  { %v1789_v23 = vpop.f32.mrb[62].mxu0 }
 0x6d0   :  { %v4207_v24 = vpop.f32.mrb[63].mxu0  ;;  %4227 = vmatmul.mubr.msk.bf16.gmra.mrb[84].mxu1 %vm581_vm2, %v1891_v14 }
 0x6d1   :  { %v1835_v4 = vpop.f32.mrb[76].mxu1  ;;  %4230 = vmatprep.mubr.msk.bf16.mxu1 %vm4798_vm0, %v4797_v0 }
 0x6d2   :  { %v4212_v18 = vpop.f32.mrb[77].mxu1 }
 0x6d3   :  { %v1838_v22 = vpop.f32.mrb[78].mxu1 }
 0x6d4   :  { %v4213_v26 = vpop.f32.mrb[79].mxu1 }
 0x6d5   :  { %v1884_v28 = vpop.f32.mrb[64].mxu0 }
 0x6d6   :  { %v1892_v30 = vpack.c.bf16 %v1884_v28, %v1835_v4  ;;  %v4218_v11 = vpop.f32.mrb[65].mxu0 }
 0x6d7   :  { %v1887_v34 = vpop.f32.mrb[66].mxu0 }
 0x6d8   :  { %v4219_v39 = vpop.f32.mrb[67].mxu0  ;;  %4231 = vmatmul.mubr.msk.bf16.gmra.mrb[88].mxu1 %vm581_vm2, %v1892_v30 }
 0x6d9   :  { %4250 = vmatprep.mubr.msk.bf16.mxu1 %vm4798_vm0, %v4797_v0 }
 0x6dd   :  { %v2011_v42 = vpop.f32.mrb[68].mxu0 }
 0x6de   :  { %v4238_v38 = vpop.f32.mrb[69].mxu0 }
 0x6df   :  { %v2014_v47 = vpop.f32.mrb[70].mxu0 }
 0x6e0   :  { %v4239_v49 = vpop.f32.mrb[71].mxu0  ;;  %4251 = vmatmul.mubr.msk.bf16.vlgmr.msra.gmra.mrb[92].mxu1 %vm581_vm2, %v2035_v20 }
 0x6e1   :  { %4261 = vmatpush3.bf16.xpose.msra.mxu1 %v2142_v41  ;;  %4262 = vmatprep.mubr.msk.bf16.mxu1 %vm4798_vm0, %v4797_v0 }
 0x6e2   :  { %4272 = vmatprep.subr.bf16.mxu1 %v4797_v0 }
 0x6e5   :  { %v2019_v32 = vpop.f32.mrb[72].mxu0 }
 0x6e6   :  { %v4242_v33 = vpop.f32.mrb[73].mxu0 }
 0x6e7   :  { %v2022_v40 = vpop.f32.mrb[74].mxu0 }
 0x6e8   :  { %v4243_v46 = vpop.f32.mrb[75].mxu0  ;;  %4263 = vmatmul.mubr.msk.bf16.vlgmr.msra.gmra.mrb[96].mxu1 %vm581_vm2, %v2135_v43 }
 0x6e9   :  { %4273 = vmatpush3.bf16.xpose.msra.mxu1 %v2242_v44  ;;  %4274 = vmatprep.mubr.msk.bf16.mxu1 %vm4798_vm0, %v4797_v0 }
 0x6ea   :  { %4284 = vmatprep.subr.bf16.mxu1 %v4797_v0 }
 0x6ed   :  { %v2027_v50 = vpop.f32.mrb[76].mxu0 }
 0x6ee   :  { %v4246_v16 = vpop.f32.mrb[77].mxu0 }
 0x6ef   :  { %v2030_v52 = vpop.f32.mrb[78].mxu0 }
 0x6f0   :  { %v4247_v54 = vpop.f32.mrb[79].mxu0  ;;  %4275 = vmatmul.mubr.msk.bf16.vlgmr.msra.gmra.mrb[100].mxu1 %vm581_vm2, %v2235_v5 }
 0x6f1   :  { %4286 = vmatprep.mubr.msk.bf16.mxu1 %vm4798_vm0, %v4797_v0 }
 0x6f5   :  { %v2128_v55 = vpop.f32.mrb[80].mxu0 }
 0x6f6   :  { %v4258_v57 = vpop.f32.mrb[81].mxu0  ;;  %v2337_v60 = vsel %vm858_vm4, %v2128_v55, -inf }
 0x6f7   :  { %2338 = vmax.xlane.f32.xlu1 %v2337_v60  ;;  %v2131_v63 = vpop.f32.mrb[82].mxu0 }
 0x6f8   :  { %v4259_v3 = vpop.f32.mrb[83].mxu0 }
 0x6fd   :  { %v5451_v8 = vpop.f32.mrb[84].mxu0 }
 0x6fe   :  { %v4270_v7 = vpop.f32.mrb[85].mxu0  ;;  %v2343_v63 = vsel %vm858_vm4, %v5451_v8, -inf }
 0x6ff   :  { %v2231_v62 = vpop.f32.mrb[86].mxu0 }
 0x700   :  { %v4271_v58 = vpop.f32.mrb[87].mxu0 }
 0x705   :  { %v2328_v10 = vpop.f32.mrb[88].mxu0 }
 0x706   :  { %v4282_v59 = vpop.f32.mrb[89].mxu0  ;;  %v2349_v12 = vsel %vm858_vm4, %v2328_v10, -inf }
 0x707   :  { %2350 = vmax.xlane.f32.xlu1 %v2349_v12  ;;  %v2331_v13 = vpop.f32.mrb[90].mxu0 }
 0x708   :  { %v4283_v14 = vpop.f32.mrb[91].mxu0 }
 0x784   :  { %v2339_v17 = vpop.xlane.xlu1 %2338 }
 0x785   :  { %v2353_v23 = vsub.f32 %v2128_v55, %v2339_v17 }
 0x787   :  { %v2360_v24 = vmul.f32 1.442695, %v2353_v23 }
 0x789   :  { %4546 = vpow2.f32 %v2360_v24 }
 0x793   :  { %v5454_v4 = vpop.eup %4546 }
 0x794   :  { %v2373_v18 = vsel %vm858_vm4, %v5454_v4, 0.0  ;;  %v2351_v14 = vpop.xlane.xlu1 %2350 }
 0x795   :  { %2374 = vadd.xlane.f32.xlu1 %v2373_v18  ;;  %v2357_v23 = vsub.f32 %v2328_v10, %v2351_v14 }
 0x79b   :  { %v1942_v20 = vpop.f32.mrb[80].mxu1 }
 0x79c   :  { %v5458_v22 = vadd.f32 %v2011_v42, %v1942_v20  ;;  %v4224_v26 = vpop.f32.mrb[81].mxu1 }
 0x79d   :  { %v1945_v28 = vpop.f32.mrb[82].mxu1  ;;  %v2368_v26 = vmul.f32 1.442695, %v2357_v23 }
 0x79e   :  { %v5460_v30 = vadd.f32 %v2014_v47, %v1945_v28  ;;  %v4225_v11 = vpop.f32.mrb[83].mxu1 }
 0x7a3   :  { %v1950_v34 = vpop.f32.mrb[84].mxu1 }
 0x7a4   :  { %v5462_v39 = vadd.f32 %v2019_v32, %v1950_v34  ;;  %v4228_v31 = vpop.f32.mrb[85].mxu1 }
 0x7a5   :  { %v1953_v38 = vpop.f32.mrb[86].mxu1 }
 0x7a6   :  { %v5464_v43 = vadd.f32 %v2022_v40, %v1953_v38  ;;  %v4229_v41 = vpop.f32.mrb[87].mxu1 }
 0x7ab   :  { %v1958_v49 = vpop.f32.mrb[88].mxu1 }
 0x7ac   :  { %v5466_v27 = vadd.f32 %v2027_v50, %v1958_v49  ;;  %v4232_v33 = vpop.f32.mrb[89].mxu1 }
 0x7ad   :  { %v1961_v44 = vpop.f32.mrb[90].mxu1 }
 0x7ae   :  { %v5468_v42 = vadd.f32 %v2030_v52, %v1961_v44  ;;  %v4233_v46 = vpop.f32.mrb[91].mxu1 }
 0x7b3   :  { %v2078_v16 = vpop.f32.mrb[92].mxu1 }
 0x7b4   :  { %v4252_v47 = vpop.f32.mrb[93].mxu1  ;;  %v2334_v5 = vsel %vm858_vm4, %v2078_v16, -inf }
 0x7b5   :  { %2335 = vmax.xlane.f32.xlu0 %v2334_v5  ;;  %v2081_v32 = vpop.f32.mrb[94].mxu1 }
 0x7b6   :  { %v4253_v54 = vpop.f32.mrb[95].mxu1 }
 0x7bb   :  { %v2178_v55 = vpop.f32.mrb[96].mxu1 }
 0x7bc   :  { %v4264_v57 = vpop.f32.mrb[97].mxu1  ;;  %v2340_v40 = vsel %vm858_vm4, %v2178_v55, -inf }
 0x7bd   :  { %2341 = vmax.xlane.f32.xlu0 %v2340_v40  ;;  %v2181_v60 = vpop.f32.mrb[98].mxu1 }
 0x7be   :  { %v4265_v50 = vpop.f32.mrb[99].mxu1 }
 0x7c1   :  { %2344 = vmax.xlane.f32.xlu0 %v2343_v63 }
 0x7c3   :  { %v2278_v52 = vpop.f32.mrb[100].mxu1 }
 0x7c4   :  { %v4276_v3 = vpop.f32.mrb[101].mxu1  ;;  %v2346_v7 = vsel %vm858_vm4, %v2278_v52, -inf }
 0x7c5   :  { %v2281_v62 = vpop.f32.mrb[102].mxu1  ;;  %2347 = vmax.xlane.f32.xlu0 %v2346_v7 }
 0x7c6   :  { %v4277_v58 = vpop.f32.mrb[103].mxu1 }
 0x842   :  { %v2336_v59 = vpop.xlane.xlu0 %2335 }
 0x843   :  { %v2352_v12 = vsub.f32 %v2078_v16, %v2336_v59 }
 0x845   :  { %v2358_v13 = vmul.f32 1.442695, %v2352_v12 }
 0x847   :  { %4548 = vpow2.f32 %v2358_v13 }
 0x84a   :  { %v2342_v17 = vpop.xlane.xlu0 %2341 }
 0x84e   :  { %v2345_v24 = vpop.xlane.xlu0 %2344 }
 0x84f   :  { %v2355_v18 = vsub.f32 %v5451_v8, %v2345_v24  ;;  %v2354_v8 = vsub.f32 %v2178_v55, %v2342_v17 }
 0x851   :  { %v4549_v20 = vpop.eup %4548  ;;  %v2364_v28 = vmul.f32 1.442695, %v2355_v18  ;;  %v2362_v49 = vmul.f32 1.442695, %v2354_v8 }
 0x852   :  { %v2370_v11 = vsel %vm858_vm4, %v4549_v20, 0.0  ;;  %v2348_v41 = vpop.xlane.xlu0 %2347 }
 0x853   :  { %4550 = vpow2.f32 %v2364_v28  ;;  %2371 = vadd.xlane.f32.xlu0 %v2370_v11  ;;  %v2356_v33 = vsub.f32 %v2278_v52, %v2348_v41 }
 0x854   :  { %4552 = vpow2.f32 %v2368_v26 }
 0x855   :  { %4554 = vpow2.f32 %v2362_v49  ;;  %v2366_v44 = vmul.f32 1.442695, %v2356_v33 }
 0x857   :  { %4556 = vpow2.f32 %v2366_v44 }
 0x85d   :  { %v5477_v34 = vpop.eup %4550 }
 0x85e   :  { %v2379_v31 = vsel %vm858_vm4, %v5477_v34, 0.0  ;;  %v5481_v38 = vpop.eup %4552 }
 0x85f   :  { %2380 = vadd.xlane.f32.xlu1 %v2379_v31  ;;  %v2385_v10 = vsel %vm858_vm4, %v5481_v38, 0.0  ;;  %v5495_v46 = vpop.eup %4554 }
 0x860   :  { %v2376_v16 = vsel %vm858_vm4, %v5495_v46, 0.0 }
 0x861   :  { %v5501_v47 = vpop.eup %4556 }
 0x862   :  { %v2382_v5 = vsel %vm858_vm4, %v5501_v47, 0.0 }
 0x863   :  { %2386 = vadd.xlane.f32.xlu1 %v2385_v10 }
 0x869   :  { %2406 = vrot.lane.b32.xlu0 %v5151_v15, %s4800_s5 }
 0x874   :  { %2454 = vrot.lane.b32.xlu1 %v5155_v25, %s4800_s5 }
 0x878   :  { %2502 = vrot.lane.b32.xlu1 %v5161_v37, %s4800_s5 }
 0x87c   :  { %2550 = vrot.lane.b32.xlu1 %v5163_v45, %s4800_s5 }
 0x880   :  { %2646 = vrot.lane.b32.xlu1 %v5167_v9, %s4800_s5 }
 0x884   :  { %2774 = vrot.lane.b32.xlu1 %v5078_v21, %s4801_s19 }
 0x888   :  { %2377 = vadd.xlane.f32.xlu0 %v2376_v16  ;;  %2824 = vrot.lane.b32.xlu1 %v5094_v36, %s4801_s19  ;;  %v2698_v16 = vld [vmem:[#allocation11 + $0x8] sm:$0xf] }
 0x88c   :  { %2383 = vadd.xlane.f32.xlu0 %v2382_v5  ;;  %2926 = vrot.lane.b32.xlu1 %v5092_v35, %s4801_s19  ;;  %v2375_v35 = vpop.xlane.xlu1 %2374 }
 0x890   :  { %2924 = vrot.lane.b32.xlu1 %v5114_v48, %s4801_s19 }
 0x894   :  { %3026 = vrot.lane.b32.xlu1 %v5132_v1, %s4801_s19 }
 0x898   :  { %3024 = vrot.lane.b32.xlu1 %v5145_v56, %s4801_s19 }
 0x8a2   :  { %2598 = vrot.lane.b32.xlu0 %v5165_v61, %s4800_s5 }
 0x8a6   :  { %2776 = vrot.lane.b32.xlu0 %v5063_v6, %s4801_s19 }
 0x8aa   :  { %2826 = vrot.lane.b32.xlu0 %v5076_v19, %s4801_s19 }
 0x8ae   :  { %2876 = vrot.lane.b32.xlu0 %v5087_v29, %s4801_s19 }
 0x8b2   :  { %2874 = vrot.lane.b32.xlu0 %v5112_v51, %s4801_s19 }
 0x8b6   :  { %2976 = vrot.lane.b32.xlu0 %v5116_v53, %s4801_s19 }
 0x8ba   :  { %2974 = vrot.lane.b32.xlu0 %v5134_v2, %s4801_s19 }
 0x8e0   :  { %v2372_v21 = vpop.xlane.xlu0 %2371 }
 0x8e1   :  { %4558 = vrcp.f32 %v2372_v21 }
 0x8e2   :  { %4560 = vrcp.f32 %v2375_v35 }
 0x8e4   :  { %v2407_v36 = vpop.permute.xlu0 %2406 }
 0x8e5   :  { %v2412_v6 = vsel %vm934_vm3, %v2407_v36, 0 }
 0x8e6   :  { %4285 = vmatpush3.bf16.msra.mxu1 %v2412_v6 }
 0x8e7   :  { %4296 = vmatprep.subr.bf16.mxu1 %v4797_v0 }
 0x8eb   :  { %v4559_v19 = vpop.eup %4558 }
 0x8ec   :  { %v2394_v29 = vmul.f32 %v4559_v19, %v4549_v20  ;;  %v2381_v48 = vpop.xlane.xlu1 %2380  ;;  %v4561_v1 = vpop.eup %4560 }
 0x8ed   :  { %4562 = vrcp.f32 %v2381_v48  ;;  %v2395_v2 = vmul.f32 %v4561_v1, %v5454_v4 }
 0x8ee   :  { %v2400_v51 = vpack.c.bf16 %v2394_v29, %v2394_v29 }
 0x8ef   :  { %v2401_v54 = vpack.c.bf16 %v2395_v2, %v2395_v2 }
 0x8f0   :  { %4287 = vmatmul.mubr.msk.bf16.vlgmr.msra.gmra.mrb[104].mxu1 %vm858_vm4, %v2400_v51  ;;  %v2387_v53 = vpop.xlane.xlu1 %2386 }
 0x8f1   :  { %4298 = vmatprep.mubr.msk.bf16.mxu1 %vm4798_vm0, %v4797_v0  ;;  %4564 = vrcp.f32 %v2387_v53 }
 0x8f4   :  { %v2455_v56 = vpop.permute.xlu1 %2454 }
 0x8f5   :  { %v2460_v32 = vsel %vm934_vm3, %v2455_v56, 0 }
 0x8f6   :  { %4291 = vmatpush3.bf16.msra.mxu0 %v2460_v32 }
 0x8f7   :  { %4302 = vmatprep.subr.bf16.mxu0 %v4797_v0  ;;  %v4563_v55 = vpop.eup %4562 }
 0x8f8   :  { %v2503_v57 = vpop.permute.xlu1 %2502  ;;  %v2397_v4 = vmul.f32 %v4563_v55, %v5477_v34 }
 0x8f9   :  { %v2508_v40 = vsel %vm934_vm3, %v2503_v57, 0  ;;  %4293 = vmatmul.mubr.msk.bf16.vlgmr.msra.gmra.mrb[92].mxu0 %vm858_vm4, %v2401_v54 }
 0x8fa   :  { %4297 = vmatpush3.bf16.msra.mxu1 %v2508_v40  ;;  %4304 = vmatprep.mubr.msk.bf16.mxu0 %vm4798_vm0, %v4797_v0  ;;  %v2403_v63 = vpack.c.bf16 %v2397_v4, %v2397_v4 }
 0x8fb   :  { %4308 = vmatprep.subr.bf16.mxu1 %v4797_v0  ;;  %v4565_v52 = vpop.eup %4564 }
 0x8fc   :  { %v2551_v60 = vpop.permute.xlu1 %2550  ;;  %v2399_v62 = vmul.f32 %v4565_v52, %v5481_v38 }
 0x8fd   :  { %v2556_v50 = vsel %vm934_vm3, %v2551_v60, 0 }
 0x8fe   :  { %4303 = vmatpush3.bf16.msra.mxu0 %v2556_v50  ;;  %v2405_v58 = vpack.c.bf16 %v2399_v62, %v2399_v62 }
 0x8ff   :  { %4314 = vmatprep.subr.bf16.mxu0 %v4797_v0 }
 0x900   :  { %v2647_v3 = vpop.permute.xlu1 %2646 }
 0x901   :  { %v2652_v7 = vsel %vm934_vm3, %v2647_v3, 0  ;;  %4305 = vmatmul.mubr.msk.bf16.vlgmr.msra.gmra.mrb[96].mxu0 %vm858_vm4, %v2403_v63 }
 0x902   :  { %4315 = vmatpush3.bf16.msra.mxu0 %v2652_v7  ;;  %4316 = vmatprep.mubr.msk.bf16.mxu0 %vm4798_vm0, %v4797_v0 }
 0x903   :  { %4334 = vmatprep.subr.bf16.mxu0 %v4797_v0 }
 0x904   :  { %v2775_v34 = vpop.permute.xlu1 %2774 }
 0x908   :  { %v2825_v8 = vpop.permute.xlu1 %2824 }
 0x909   :  { %4317 = vmatmul.mubr.msk.bf16.vlgmr.msra.gmra.mrb[100].mxu0 %vm858_vm4, %v2405_v58 }
 0x90a   :  { %4336 = vmatprep.mubr.msk.bf16.mxu0 %vm4798_vm0, %v4797_v0 }
 0x90c   :  { %v2927_v6 = vpop.permute.xlu1 %2926 }
 0x90d   :  { %v2932_v1 = vsel %vm581_vm2, %v2927_v6, 0 }
 0x915   :  { %v2378_v59 = vpop.xlane.xlu0 %2377 }
 0x916   :  { %4566 = vrcp.f32 %v2378_v59 }
 0x919   :  { %v2384_v12 = vpop.xlane.xlu0 %2383 }
 0x91a   :  { %4568 = vrcp.f32 %v2384_v12 }
 0x91d   :  { %v2599_v13 = vpop.permute.xlu0 %2598 }
 0x91e   :  { %v2604_v26 = vsel %vm934_vm3, %v2599_v13, 0 }
 0x920   :  { %v4567_v14 = vpop.eup %4566 }
 0x921   :  { %v2396_v17 = vmul.f32 %v4567_v14, %v5495_v46  ;;  %v2777_v23 = vpop.permute.xlu0 %2776 }
 0x922   :  { %v2782_v24 = vsel %vm581_vm2, %v2777_v23, 0  ;;  %v2925_v23 = vpop.permute.xlu1 %2924 }
 0x923   :  { %4335 = vmatpush3.bf16.xpose.msra.mxu0 %v2782_v24  ;;  %v2402_v18 = vpack.c.bf16 %v2396_v17, %v2396_v17 }
 0x924   :  { %v4569_v20 = vpop.eup %4568  ;;  %4340 = vmatprep.subr.bf16.mxu0 %v4797_v0 }
 0x925   :  { %v2827_v28 = vpop.permute.xlu0 %2826  ;;  %4299 = vmatmul.mubr.msk.bf16.vlgmr.msra.gmra.mrb[108].mxu1 %vm858_vm4, %v2402_v18  ;;  %v2398_v11 = vmul.f32 %v4569_v20, %v5501_v47  ;;  %v2709_v47 = vsel %vm1904_vm5, %v2698_v16, 0 }
 0x926   :  { %4309 = vmatpush3.bf16.msra.mxu1 %v2604_v26  ;;  %4310 = vmatprep.mubr.msk.bf16.mxu1 %vm4798_vm0, %v4797_v0  ;;  %v2832_v31 = vsel %vm581_vm2, %v2827_v28, 0 }
 0x927   :  { %4320 = vmatprep.subr.bf16.mxu1 %v4797_v0  ;;  %v2404_v10 = vpack.c.bf16 %v2398_v11, %v2398_v11 }
 0x929   :  { %v2877_v38 = vpop.permute.xlu0 %2876 }
 0x92a   :  { %4337 = vmatmul.mubr.msk.bf16.vlgmr.msra.gmra.mrb[104].mxu0 %vm581_vm2, %v2775_v34  ;;  %v2882_v49 = vsel %vm581_vm2, %v2877_v38, 0  ;;  %v3027_v34 = vpop.permute.xlu1 %3026 }
 0x92b   :  { %4341 = vmatpush3.bf16.xpose.msra.mxu0 %v2832_v31  ;;  %4342 = vmatprep.mubr.msk.bf16.mxu0 %vm4798_vm0, %v4797_v0  ;;  %v3032_v38 = vsel %vm581_vm2, %v3027_v34, 0 }
 0x92c   :  { %4346 = vmatprep.subr.bf16.mxu0 %v4797_v0 }
 0x92d   :  { %4311 = vmatmul.mubr.msk.bf16.vlgmr.msra.gmra.mrb[112].mxu1 %vm858_vm4, %v2404_v10  ;;  %v2875_v41 = vpop.permute.xlu0 %2874 }
 0x92e   :  { %4322 = vmatprep.mubr.msk.bf16.mxu1 %vm4798_vm0, %v4797_v0  ;;  %4321 = vmatpush3.bf16.msra.mxu1 %v2709_v47 }
 0x92f   :  { %4352 = vmatprep.subr.bf16.mxu1 %v4797_v0 }
 0x931   :  { %v2977_v33 = vpop.permute.xlu0 %2976 }
 0x932   :  { %4343 = vmatmul.mubr.msk.bf16.vlgmr.msra.gmra.mrb[108].mxu0 %vm581_vm2, %v2825_v8  ;;  %v2982_v44 = vsel %vm581_vm2, %v2977_v33, 0 }
 0x933   :  { %4347 = vmatpush3.bf16.xpose.msra.mxu0 %v2882_v49  ;;  %4348 = vmatprep.mubr.msk.bf16.mxu0 %vm4798_vm0, %v4797_v0 }
 0x934   :  { %4358 = vmatprep.subr.bf16.mxu0 %v4797_v0 }
 0x935   :  { %v2975_v46 = vpop.permute.xlu0 %2974 }
 0x93a   :  { %4349 = vmatmul.mubr.msk.bf16.vlgmr.msra.gmra.mrb[112].mxu0 %vm581_vm2, %v2875_v41 }
 0x93b   :  { %4359 = vmatpush3.bf16.xpose.msra.mxu0 %v2982_v44  ;;  %4360 = vmatprep.mubr.msk.bf16.mxu0 %vm4798_vm0, %v4797_v0  ;;  %v3025_v44 = vpop.permute.xlu1 %3024 }
 0x93c   :  { %4370 = vmatprep.subr.bf16.mxu0 %v4797_v0 }
 0x942   :  { %4361 = vmatmul.mubr.msk.bf16.vlgmr.msra.gmra.mrb[116].mxu0 %vm581_vm2, %v2975_v46 }
 0x943   :  { %4372 = vmatprep.mubr.msk.bf16.mxu0 %vm4798_vm0, %v4797_v0 }
 0x9c3   :  { %v2448_v5 = vpop.f32.mrb[104].mxu1 }
 0x9c4   :  { %v4288_v21 = vpop.f32.mrb[105].mxu1 }
 0x9c5   :  { %v2451_v35 = vpop.f32.mrb[106].mxu1 }
 0x9c6   :  { %v4289_v36 = vpop.f32.mrb[107].mxu1 }
 0x9cc   :  { %v2496_v19 = vpop.f32.mrb[92].mxu0 }
 0x9cd   :  { %v2694_v29 = vpack.c.bf16 %v2496_v19, %v2448_v5  ;;  %v4294_v48 = vpop.f32.mrb[93].mxu0 }
 0x9ce   :  { %v2499_v51 = vpop.f32.mrb[94].mxu0 }
 0x9cf   :  { %v4295_v53 = vpop.f32.mrb[95].mxu0  ;;  %4323 = vmatmul.mubr.msk.bf16.vlgmr.msra.gmra.mrb[116].mxu1 %vm581_vm2, %v2694_v29 }
 0x9d0   :  { %4353 = vmatpush3.bf16.xpose.msra.mxu1 %v2932_v1  ;;  %4326 = vmatprep.mubr.msk.bf16.mxu1 %vm4798_vm0, %v4797_v0 }
 0x9d1   :  { %4364 = vmatprep.subr.bf16.mxu1 %v4797_v0 }
 0x9d4   :  { %v2592_v2 = vpop.f32.mrb[96].mxu0 }
 0x9d5   :  { %v4306_v56 = vpop.f32.mrb[97].mxu0 }
 0x9d6   :  { %v2595_v32 = vpop.f32.mrb[98].mxu0 }
 0x9d7   :  { %v4307_v54 = vpop.f32.mrb[99].mxu0 }
 0x9dc   :  { %v2688_v55 = vpop.f32.mrb[100].mxu0 }
 0x9dd   :  { %v4318_v57 = vpop.f32.mrb[101].mxu0 }
 0x9de   :  { %v2691_v40 = vpop.f32.mrb[102].mxu0 }
 0x9df   :  { %v4319_v4 = vpop.f32.mrb[103].mxu0 }
 0x9f8   :  { %v2544_v60 = vpop.f32.mrb[108].mxu1 }
 0x9f9   :  { %v2695_v50 = vpack.c.bf16 %v2592_v2, %v2544_v60  ;;  %v4300_v63 = vpop.f32.mrb[109].mxu1 }
 0x9fa   :  { %v2547_v52 = vpop.f32.mrb[110].mxu1 }
 0x9fb   :  { %v4301_v3 = vpop.f32.mrb[111].mxu1  ;;  %4327 = vmatmul.mubr.msk.bf16.gmra.mrb[120].mxu1 %vm581_vm2, %v2695_v50 }
 0x9fc   :  { %4330 = vmatprep.mubr.msk.bf16.mxu1 %vm4798_vm0, %v4797_v0 }
 0x9fd   :  { %v2818_v7 = vpop.f32.mrb[104].mxu0 }
 0x9fe   :  { %v4338_v62 = vpop.f32.mrb[105].mxu0  ;;  %v3074_v58 = vsel %vm858_vm4, %v2818_v7, -inf }
 0x9ff   :  { %3075 = vmax.xlane.f32.xlu0 %v3074_v58  ;;  %v2821_v59 = vpop.f32.mrb[106].mxu0 }
 0xa00   :  { %v2640_v12 = vpop.f32.mrb[112].mxu1  ;;  %v4339_v13 = vpop.f32.mrb[107].mxu0 }
 0xa01   :  { %v2696_v14 = vpack.c.bf16 %v2688_v55, %v2640_v12  ;;  %v4312_v17 = vpop.f32.mrb[113].mxu1 }
 0xa02   :  { %v2643_v24 = vpop.f32.mrb[114].mxu1 }
 0xa03   :  { %v4313_v18 = vpop.f32.mrb[115].mxu1  ;;  %4331 = vmatmul.mubr.msk.bf16.gmra.mrb[124].mxu1 %vm581_vm2, %v2696_v14 }
 0xa04   :  { %4354 = vmatprep.mubr.msk.bf16.mxu1 %vm4798_vm0, %v4797_v0 }
 0xa05   :  { %v2868_v20 = vpop.f32.mrb[108].mxu0 }
 0xa06   :  { %v4344_v26 = vpop.f32.mrb[109].mxu0  ;;  %v3077_v28 = vsel %vm858_vm4, %v2868_v20, -inf }
 0xa07   :  { %3078 = vmax.xlane.f32.xlu1 %v3077_v28  ;;  %v2871_v11 = vpop.f32.mrb[110].mxu0 }
 0xa08   :  { %v4345_v31 = vpop.f32.mrb[111].mxu0 }
 0xa0b   :  { %4355 = vmatmul.mubr.msk.bf16.vlgmr.msra.gmra.mrb[128].mxu1 %vm581_vm2, %v2925_v23 }
 0xa0c   :  { %4365 = vmatpush3.bf16.xpose.msra.mxu1 %v3032_v38  ;;  %4366 = vmatprep.mubr.msk.bf16.mxu1 %vm4798_vm0, %v4797_v0 }
 0xa0d   :  { %v2918_v10 = vpop.f32.mrb[112].mxu0  ;;  %4376 = vmatprep.subr.bf16.mxu1 %v4797_v0 }
 0xa0e   :  { %v4350_v8 = vpop.f32.mrb[113].mxu0  ;;  %v3080_v41 = vsel %vm858_vm4, %v2918_v10, -inf }
 0xa0f   :  { %3081 = vmax.xlane.f32.xlu0 %v3080_v41  ;;  %v2921_v49 = vpop.f32.mrb[114].mxu0 }
 0xa10   :  { %v4351_v33 = vpop.f32.mrb[115].mxu0 }
 0xa13   :  { %4367 = vmatmul.mubr.msk.bf16.vlgmr.msra.gmra.mrb[132].mxu1 %vm581_vm2, %v3025_v44 }
 0xa14   :  { %4378 = vmatprep.mubr.msk.bf16.mxu1 %vm4798_vm0, %v4797_v0 }
 0xa15   :  { %v5608_v46 = vpop.f32.mrb[116].mxu0 }
 0xa16   :  { %v4362_v16 = vpop.f32.mrb[117].mxu0 }
 0xa17   :  { %v3021_v47 = vpop.f32.mrb[118].mxu0 }
 0xa18   :  { %v4363_v5 = vpop.f32.mrb[119].mxu0 }
 0xa8c   :  { %v3076_v51 = vpop.xlane.xlu0 %3075 }
 0xa8d   :  { %v3092_v54 = vsub.f32 %v2818_v7, %v3076_v51 }
 0xa8f   :  { %v3098_v40 = vmul.f32 1.442695, %v3092_v54 }
 0xa91   :  { %4570 = vpow2.f32 %v3098_v40 }
 0xa9b   :  { %v5631_v13 = vpop.eup %4570 }
 0xa9c   :  { %v3082_v55 = vpop.xlane.xlu0 %3081  ;;  %v3110_v24 = vsel %vm858_vm4, %v5631_v13, 0.0 }
 0xa9d   :  { %v3094_v4 = vsub.f32 %v2918_v10, %v3082_v55 }
 0xaa2   :  { %v2745_v21 = vpop.f32.mrb[116].mxu1 }
 0xaa3   :  { %v5611_v35 = vadd.f32 %v2745_v21, %v5458_v22  ;;  %v4324_v36 = vpop.f32.mrb[117].mxu1  ;;  %v3079_v22 = vpop.xlane.xlu1 %3078 }
 0xaa4   :  { %v2748_v6 = vpop.f32.mrb[118].mxu1  ;;  %v3093_v57 = vsub.f32 %v2868_v20, %v3079_v22 }
 0xaa5   :  { %v5614_v19 = vadd.f32 %v2748_v6, %v5460_v30  ;;  %v4325_v29 = vpop.f32.mrb[119].mxu1 }
 0xace   :  { %v2753_v48 = vpop.f32.mrb[120].mxu1 }
 0xacf   :  { %v5617_v1 = vadd.f32 %v2753_v48, %v5462_v39  ;;  %v4328_v53 = vpop.f32.mrb[121].mxu1  ;;  %v3100_v39 = vmul.f32 1.442695, %v3093_v57 }
 0xad0   :  { %v2756_v2 = vpop.f32.mrb[122].mxu1 }
 0xad1   :  { %v5620_v56 = vadd.f32 %v2756_v2, %v5464_v43  ;;  %v4329_v32 = vpop.f32.mrb[123].mxu1  ;;  %v3102_v43 = vmul.f32 1.442695, %v3094_v4  ;;  %4572 = vpow2.f32 %v3100_v39 }
 0xad3   :  { %4574 = vpow2.f32 %v3102_v43 }
 0xad6   :  { %v2761_v30 = vpop.f32.mrb[124].mxu1 }
 0xad7   :  { %v5623_v60 = vadd.f32 %v2761_v30, %v5466_v27  ;;  %v4332_v50 = vpop.f32.mrb[125].mxu1  ;;  %v3086_v27 = vsel %vm858_vm4, %v5608_v46, -inf }
 0xad8   :  { %v2764_v63 = vpop.f32.mrb[126].mxu1 }
 0xad9   :  { %v5626_v52 = vadd.f32 %v2764_v63, %v5468_v42  ;;  %v4333_v3 = vpop.f32.mrb[127].mxu1 }
 0xadb   :  { %v4573_v14 = vpop.eup %4572 }
 0xadc   :  { %v3113_v28 = vsel %vm858_vm4, %v4573_v14, 0.0 }
 0xadd   :  { %v5636_v18 = vpop.eup %4574 }
 0xade   :  { %v2968_v7 = vpop.f32.mrb[128].mxu1  ;;  %v3116_v11 = vsel %vm858_vm4, %v5636_v18, 0.0 }
 0xadf   :  { %v4356_v62 = vpop.f32.mrb[129].mxu1  ;;  %v3083_v58 = vsel %vm858_vm4, %v2968_v7, -inf }
 0xae0   :  { %v2971_v59 = vpop.f32.mrb[130].mxu1  ;;  %3084 = vmax.xlane.f32.xlu0 %v3083_v58 }
 0xae1   :  { %v4357_v12 = vpop.f32.mrb[131].mxu1 }
 0xae4   :  { %3087 = vmax.xlane.f32.xlu0 %v3086_v27 }
 0xae6   :  { %v3068_v42 = vpop.f32.mrb[132].mxu1 }
 0xae7   :  { %v4368_v17 = vpop.f32.mrb[133].mxu1  ;;  %v3089_v23 = vsel %vm858_vm4, %v3068_v42, -inf }
 0xae8   :  { %v3071_v20 = vpop.f32.mrb[134].mxu1  ;;  %3090 = vmax.xlane.f32.xlu1 %v3089_v23  ;;  %3111 = vadd.xlane.f32.xlu0 %v3110_v24 }
 0xae9   :  { %v4369_v26 = vpop.f32.mrb[135].mxu1 }
 0xaec   :  { %3114 = vadd.xlane.f32.xlu1 %v3113_v28  ;;  %3117 = vadd.xlane.f32.xlu0 %v3116_v11  ;;  %v3438_v28 = vld [vmem:[#allocation11 + $0xc] sm:$0xf] }
 0xaed   :  { %v3449_v11 = vsel %vm1904_vm5, %v3438_v28, 0 }
 0xafd   :  { %3194 = vrot.lane.b32.xlu1 %v5155_v25, %s4801_s19 }
 0xb01   :  { %3242 = vrot.lane.b32.xlu1 %v5161_v37, %s4801_s19 }
 0xb05   :  { %3290 = vrot.lane.b32.xlu1 %v5163_v45, %s4801_s19 }
 0xb6d   :  { %v3085_v34 = vpop.xlane.xlu0 %3084 }
 0xb6e   :  { %v3095_v31 = vsub.f32 %v2968_v7, %v3085_v34 }
 0xb70   :  { %v3104_v38 = vmul.f32 1.442695, %v3095_v31 }
 0xb71   :  { %v3088_v10 = vpop.xlane.xlu0 %3087 }
 0xb72   :  { %4576 = vpow2.f32 %v3104_v38  ;;  %v3096_v8 = vsub.f32 %v5608_v46, %v3088_v10 }
 0xb74   :  { %v3106_v41 = vmul.f32 1.442695, %v3096_v8 }
 0xb75   :  { %v3091_v49 = vpop.xlane.xlu1 %3090  ;;  %v3112_v32 = vpop.xlane.xlu0 %3111 }
 0xb76   :  { %4578 = vpow2.f32 %v3106_v41  ;;  %v3097_v33 = vsub.f32 %v3068_v42, %v3091_v49 }
 0xb78   :  { %v3108_v44 = vmul.f32 1.442695, %v3097_v33 }
 0xb79   :  { %v3115_v16 = vpop.xlane.xlu1 %3114  ;;  %v3118_v54 = vpop.xlane.xlu0 %3117 }
 0xb7a   :  { %4580 = vpow2.f32 %v3108_v44 }
 0xb7b   :  { %4582 = vrcp.f32 %v3115_v16 }
 0xb7c   :  { %v4577_v25 = vpop.eup %4576  ;;  %4584 = vrcp.f32 %v3112_v32  ;;  %v4493_v32 = vld [vmem:[%s5825_s10 + $0x8] sm:$0xff]  }
 0xb7d   :  { %v3195_v37 = vpop.permute.xlu1 %3194  ;;  %v3119_v47 = vsel %vm858_vm4, %v4577_v25, 0.0 }
 0xb7e   :  { %v3200_v45 = vsel %vm934_vm3, %v3195_v37, 0  ;;  %3120 = vadd.xlane.f32.xlu1 %v3119_v47 }
 0xb7f   :  { %4377 = vmatpush3.bf16.msra.mxu1 %v3200_v45 }
 0xb80   :  { %v5650_v5 = vpop.eup %4578  ;;  %4388 = vmatprep.subr.bf16.mxu1 %v4797_v0 }
 0xb81   :  { %v3243_v46 = vpop.permute.xlu1 %3242  ;;  %v3122_v21 = vsel %vm858_vm4, %v5650_v5, 0.0 }
 0xb82   :  { %3123 = vadd.xlane.f32.xlu0 %v3122_v21  ;;  %v3248_v39 = vsel %vm934_vm3, %v3243_v46, 0 }
 0xb84   :  { %v4581_v36 = vpop.eup %4580 }
 0xb85   :  { %v4583_v6 = vpop.eup %4582  ;;  %v3125_v29 = vsel %vm858_vm4, %v4581_v36, 0.0  ;;  %v3291_v51 = vpop.permute.xlu1 %3290 }
 0xb86   :  { %v3135_v48 = vmul.f32 %v4583_v6, %v4573_v14  ;;  %3126 = vadd.xlane.f32.xlu1 %v3125_v29  ;;  %v3296_v2 = vsel %vm934_vm3, %v3291_v51, 0  ;;  %v4585_v55 = vpop.eup %4584 }
 0xb87   :  { %v3134_v40 = vmul.f32 %v4585_v55, %v5631_v13 }
 0xb88   :  { %v3141_v53 = vpack.c.bf16 %v3135_v48, %v3135_v48 }
 0xb89   :  { %v3140_v50 = vpack.c.bf16 %v3134_v40, %v3134_v40 }
 0xb8a   :  { %4379 = vmatmul.mubr.msk.bf16.vlgmr.msra.gmra.mrb[136].mxu1 %vm858_vm4, %v3141_v53 }
 0xb8b   :  { %4389 = vmatpush3.bf16.msra.mxu1 %v3296_v2  ;;  %4390 = vmatprep.mubr.msk.bf16.mxu1 %vm4798_vm0, %v4797_v0  ;;  %v4492_v2 = vld [vmem:[%s5825_s10] sm:$0xff]  }
 0xb8c   :  { %4400 = vmatprep.subr.bf16.mxu1 %v4797_v0 }
 0xb97   :  { %3386 = vrot.lane.b32.xlu1 %v5167_v9, %s4801_s19 }
 0xb98   :  { %3146 = vrot.lane.b32.xlu0 %v5151_v15, %s4801_s19 }
 0xb9c   :  { %3338 = vrot.lane.b32.xlu0 %v5165_v61, %s4801_s19 }
 0xc0b   :  { %v3121_v22 = vpop.xlane.xlu1 %3120 }
 0xc0c   :  { %4586 = vrcp.f32 %v3121_v22  ;;  %v4495_v22 = vld [vmem:[%s5827_s12 + $0x8] sm:$0xff]  }
 0xc0d   :  { %4588 = vrcp.f32 %v3118_v54  ;;  %v4494_v54 = vld [vmem:[%s5827_s12] sm:$0xff]  }
 0xc0f   :  { %v3124_v57 = vpop.xlane.xlu0 %3123 }
 0xc13   :  { %v3127_v4 = vpop.xlane.xlu1 %3126  ;;  %v3147_v30 = vpop.permute.xlu0 %3146 }
 0xc14   :  { %4590 = vrcp.f32 %v3127_v4  ;;  %v3152_v9 = vsel %vm934_vm3, %v3147_v30, 0 }
 0xc15   :  { %4592 = vrcp.f32 %v3124_v57  ;;  %4371 = vmatpush3.bf16.msra.mxu0 %v3152_v9  ;;  %v3854_v57 = vld [vmem:[#allocation13] ss:$0 sm:$0xff] }
 0xc16   :  { %v4587_v15 = vpop.eup %4586  ;;  %4382 = vmatprep.subr.bf16.mxu0 %v4797_v0 }
 0xc17   :  { %v4589_v61 = vpop.eup %4588  ;;  %v3137_v63 = vmul.f32 %v4587_v15, %v4577_v25  ;;  %v3387_v3 = vpop.permute.xlu1 %3386 }
 0xc18   :  { %4373 = vmatmul.mubr.msk.bf16.vlgmr.msra.gmra.mrb[120].mxu0 %vm858_vm4, %v3140_v50  ;;  %v3136_v7 = vmul.f32 %v4589_v61, %v5636_v18  ;;  %v3392_v62 = vsel %vm934_vm3, %v3387_v3, 0  ;;  %v3339_v58 = vpop.permute.xlu0 %3338  ;;  %v4595_v3 = vld [vmem:[%s5815_s0 + $0x8] sm:$0xff] }
 0xc19   :  { %4383 = vmatpush3.bf16.msra.mxu0 %v3248_v39  ;;  %v3143_v43 = vpack.c.bf16 %v3137_v63, %v3137_v63  ;;  %4384 = vmatprep.mubr.msk.bf16.mxu0 %vm4798_vm0, %v4797_v0  ;;  %v3344_v42 = vsel %vm934_vm3, %v3339_v58, 0  ;;  %v4594_v63 = vld [vmem:[%s5815_s0] sm:$0xff] }
 0xc1a   :  { %4394 = vmatprep.subr.bf16.mxu0 %v4797_v0  ;;  %v3142_v12 = vpack.c.bf16 %v3136_v7, %v3136_v7 }
 0xc1b   :  { %4391 = vmatmul.mubr.msk.bf16.vlgmr.msra.gmra.mrb[140].mxu1 %vm858_vm4, %v3143_v43 }
 0xc1c   :  { %4401 = vmatpush3.bf16.msra.mxu1 %v3392_v62  ;;  %4402 = vmatprep.mubr.msk.bf16.mxu1 %vm4798_vm0, %v4797_v0 }
 0xc1d   :  { %4420 = vmatprep.subr.bf16.mxu1 %v4797_v0 }
 0xc1e   :  { %v4591_v59 = vpop.eup %4590 }
 0xc1f   :  { %v4593_v27 = vpop.eup %4592  ;;  %v3139_v13 = vmul.f32 %v4591_v59, %v4581_v36 }
 0xc20   :  { %4385 = vmatmul.mubr.msk.bf16.vlgmr.msra.gmra.mrb[124].mxu0 %vm858_vm4, %v3142_v12  ;;  %v3138_v17 = vmul.f32 %v4593_v27, %v5650_v5 }
 0xc21   :  { %4395 = vmatpush3.bf16.msra.mxu0 %v3344_v42  ;;  %v3145_v14 = vpack.c.bf16 %v3139_v13, %v3139_v13  ;;  %4396 = vmatprep.mubr.msk.bf16.mxu0 %vm4798_vm0, %v4797_v0  ;;  %v4596_v42 = vld [vmem:[%s5815_s0 + $0x10] sm:$0xff] }
 0xc22   :  { %4406 = vmatprep.subr.bf16.mxu0 %v4797_v0  ;;  %v3144_v23 = vpack.c.bf16 %v3138_v17, %v3138_v17 }
 0xc23   :  { %4403 = vmatmul.mubr.msk.bf16.vlgmr.msra.gmra.mrb[144].mxu1 %vm858_vm4, %v3145_v14 }
 0xc24   :  { %4424 = vmatprep.mubr.msk.bf16.mxu1 %vm4798_vm0, %v4797_v0  ;;  %4421 = vmatpush3.bf16.msra.mxu1 %v4492_v2 }
 0xc25   :  { %4422 = vmatprep.subr.bf16.mxu1 %v4797_v0 }
 0xc28   :  { %4397 = vmatmul.mubr.msk.bf16.vlgmr.msra.gmra.mrb[128].mxu0 %vm858_vm4, %v3144_v23  ;;  %4423 = vmatpush3.bf16.msra.mxu1 %v4493_v32 }
 0xc29   :  { %4408 = vmatprep.mubr.msk.bf16.mxu0 %vm4798_vm0, %v4797_v0  ;;  %4407 = vmatpush3.bf16.msra.mxu0 %v3449_v11 }
 0xc2a   :  { %4436 = vmatprep.subr.bf16.mxu0 %v4797_v0 }
 0xc5d   :  { %v3236_v24 = vpop.f32.mrb[136].mxu1 }
 0xc5e   :  { %v4380_v18 = vpop.f32.mrb[137].mxu1 }
 0xc5f   :  { %v3239_v20 = vpop.f32.mrb[138].mxu1 }
 0xc60   :  { %v4381_v26 = vpop.f32.mrb[139].mxu1 }
 0xceb   :  { %v3188_v34 = vpop.f32.mrb[120].mxu0 }
 0xcec   :  { %v3434_v31 = vpack.c.bf16 %v3236_v24, %v3188_v34  ;;  %v4374_v38 = vpop.f32.mrb[121].mxu0 }
 0xced   :  { %v3191_v10 = vpop.f32.mrb[122].mxu0 }
 0xcee   :  { %v4375_v8 = vpop.f32.mrb[123].mxu0  ;;  %v3332_v41 = vpop.f32.mrb[140].mxu1  ;;  %4409 = vmatmul.mubr.msk.bf16.vlgmr.msra.gmra.mrb[132].mxu0 %vm581_vm2, %v3434_v31  ;;  %v4598_v31 = vld [vmem:[%s5815_s0 + $0x20] sm:$0xff] }
 0xcef   :  { %v4392_v49 = vpop.f32.mrb[141].mxu1  ;;  %4412 = vmatprep.mubr.msk.bf16.mxu0 %vm4798_vm0, %v4797_v0  ;;  %4437 = vmatpush3.bf16.msra.mxu0 %v4494_v54  ;;  %v4496_v8 = vld [vmem:[%s5827_s12 + $0x10] sm:$0xff]  }
 0xcf0   :  { %v3335_v33 = vpop.f32.mrb[142].mxu1  ;;  %4438 = vmatprep.subr.bf16.mxu0 %v4797_v0  ;;  %v3855_v49 = vld [vmem:[%s5826_s11] ss:$0 sm:$0xff] }
 0xcf1   :  { %v4393_v44 = vpop.f32.mrb[143].mxu1 }
 0xcf3   :  { %v3284_v16 = vpop.f32.mrb[124].mxu0  ;;  %4439 = vmatpush3.bf16.msra.mxu0 %v4495_v22 }
 0xcf4   :  { %v3435_v25 = vpack.c.bf16 %v3332_v41, %v3284_v16  ;;  %v4386_v37 = vpop.f32.mrb[125].mxu0  ;;  %4440 = vmatprep.subr.bf16.mxu0 %v4797_v0  ;;  %v4497_v41 = vld [vmem:[%s5827_s12 + $0x18] sm:$0xff]  }
 0xcf5   :  { %v3287_v47 = vpop.f32.mrb[126].mxu0 }
 0xcf6   :  { %v4387_v45 = vpop.f32.mrb[127].mxu0  ;;  %v3428_v5 = vpop.f32.mrb[144].mxu1  ;;  %4413 = vmatmul.mubr.msk.bf16.gmra.mrb[136].mxu0 %vm581_vm2, %v3435_v25 }
 0xcf7   :  { %v4404_v46 = vpop.f32.mrb[145].mxu1  ;;  %4416 = vmatprep.mubr.msk.bf16.mxu0 %vm4798_vm0, %v4797_v0  ;;  %4441 = vmatpush3.bf16.msra.mxu0 %v4496_v8 }
 0xcf8   :  { %v3431_v21 = vpop.f32.mrb[146].mxu1  ;;  %4442 = vmatprep.subr.bf16.mxu0 %v4797_v0 }
 0xcf9   :  { %v4405_v36 = vpop.f32.mrb[147].mxu1 }
 0xcfb   :  { %v3380_v6 = vpop.f32.mrb[128].mxu0  ;;  %4443 = vmatpush3.bf16.msra.mxu0 %v4497_v41 }
 0xcfc   :  { %v3436_v29 = vpack.c.bf16 %v3428_v5, %v3380_v6  ;;  %v4398_v48 = vpop.f32.mrb[129].mxu0 }
 0xcfd   :  { %v3383_v51 = vpop.f32.mrb[130].mxu0 }
 0xcfe   :  { %v4399_v53 = vpop.f32.mrb[131].mxu0  ;;  %4417 = vmatmul.mubr.msk.bf16.gmra.mrb[140].mxu0 %vm581_vm2, %v3436_v29 }
 0xcff   :  { %4444 = vmatprep.mubr.msk.bf16.mxu0 %vm4798_vm0, %v4797_v0 }
 0xdc1   :  { %v3485_v55 = vpop.f32.mrb[132].mxu0 }
 0xdc2   :  { %v3508_v40 = vadd.f32 %v3485_v55, %v5611_v35  ;;  %v4410_v4 = vpop.f32.mrb[133].mxu0 }
 0xdc3   :  { %v3488_v30 = vpop.f32.mrb[134].mxu0 }
 0xdc4   :  { %v3521_v9 = vadd.f32 %v3854_v57, %v3508_v40  ;;  %v3509_v15 = vadd.f32 %v3488_v30, %v5614_v19  ;;  %v4411_v50 = vpop.f32.mrb[135].mxu0 }
 0xdc5   :  { %v3861_v50 = vld [vmem:[%s5828_s13] ss:$0 sm:$0xff]  ;;  %s4802_s13 = smov [#allocation14]  }
 0xdc6   :  { %v3522_v61 = vadd.f32 %v3854_v57, %v3509_v15  ;;  %v5724_v39 = vadd.f32 %v4594_v63, %v3521_v9  ;;  %s3757_s7 = sshll.u32 %s4802_s13, 4  ;;  %s3758_s7 = int_to_ptr.vmem [resolvable:$true] %s3757_s7 }
 0xdc7   :  { %s4754_s21 = scalar_lea.vmem %s3758_s7, 768  ;;  %p4759_p1 = scmp.lt.s32.totalorder %s3758_s7, %s3758_s7 }
 0xdc8   :  { %v5729_v43 = vadd.f32 %v4595_v3, %v3522_v61  ;;  %p4755_p0 = scmp.ne.s32.totalorder %s3758_s7, %s4754_s21  ;;  %p4760_p2 = scmp.lt.s32.totalorder %s4754_s21, %s4754_s21 }
 0xdc9   :  { %v3493_v35 = vpop.f32.mrb[136].mxu0 }
 0xdca   :  { %v3533_v7 = vpack.c.bf16 %v5729_v43, %v5724_v39  ;;  %v3510_v19 = vadd.f32 %v3493_v35, %v5617_v1  ;;  %v4414_v62 = vpop.f32.mrb[137].mxu0  ;;  %v4597_v1 = vld [vmem:[%s5815_s0 + $0x18] sm:$0xff]  ;;  %p4761_p3 = por %p4760_p2, %p4759_p1 }
 0xdcb   :  { %v3496_v58 = vpop.f32.mrb[138].mxu0 }
 0xdcc   :  { %v3523_v59 = vadd.f32 %v3854_v57, %v3510_v19  ;;  %v3511_v12 = vadd.f32 %v3496_v58, %v5620_v56  ;;  %v4415_v27 = vpop.f32.mrb[139].mxu0  ;;  %4425 = vmatmul.mubr.msk.bf16.vlgmr.msra.gmra.mrb[148].mxu1 %vm225_vm1, %v3533_v7  ;;  %p4762_p4 = pnand %p4761_p3, %p4755_p0 }
 0xdcd   :  { %4428 = vmatprep.mubr.msk.bf16.mxu1 %vm4798_vm0, %v4797_v0 }
 0xdce   :  { %v3524_v13 = vadd.f32 %v3854_v57, %v3511_v12  ;;  %v5741_v14 = vadd.f32 %v4596_v42, %v3523_v59 }
 0xdd0   :  { %v5746_v17 = vadd.f32 %v4597_v1, %v3524_v13 }
 0xdd1   :  { %v3501_v56 = vpop.f32.mrb[140].mxu0 }
 0xdd2   :  { %v3534_v23 = vpack.c.bf16 %v5746_v17, %v5741_v14  ;;  %v3512_v24 = vadd.f32 %v3501_v56, %v5623_v60  ;;  %v4418_v18 = vpop.f32.mrb[141].mxu0  ;;  %v4599_v60 = vld [vmem:[%s5815_s0 + $0x28] sm:$0xff] }
 0xdd3   :  { %v3504_v20 = vpop.f32.mrb[142].mxu0 }
 0xdd4   :  { %v3525_v26 = vadd.f32 %v3854_v57, %v3512_v24  ;;  %v3513_v28 = vadd.f32 %v3504_v20, %v5626_v52  ;;  %v4419_v11 = vpop.f32.mrb[143].mxu0  ;;  %4429 = vmatmul.mubr.msk.bf16.gmra.mrb[152].mxu1 %vm225_vm1, %v3534_v23 }
 0xdd5   :  { %4432 = vmatprep.mubr.msk.bf16.mxu1 %vm4798_vm0, %v4797_v0 }
 0xdd6   :  { %v3526_v34 = vadd.f32 %v3854_v57, %v3513_v28  ;;  %v5758_v38 = vadd.f32 %v4598_v31, %v3525_v26 }
 0xdd8   :  { %v5763_v10 = vadd.f32 %v4599_v60, %v3526_v34 }
 0xdda   :  { %v3535_v52 = vpack.c.bf16 %v5763_v10, %v5758_v38 }
 0xddc   :  { %4433 = vmatmul.mubr.msk.bf16.gmra.mrb[156].mxu1 %vm225_vm1, %v3535_v52 }
 0xe9f   :  { %v3602_v33 = vpop.f32.mrb[148].mxu1 }
 0xea0   :  { %v3603_v44 = vadd.f32 %v3855_v49, %v3602_v33  ;;  %v4426_v16 = vpop.f32.mrb[149].mxu1 }
 0xea1   :  { %v3605_v25 = vpop.f32.mrb[150].mxu1 }
 0xea2   :  { %v3606_v37 = vadd.f32 %v3855_v49, %v3605_v25  ;;  %v4427_v47 = vpop.f32.mrb[151].mxu1  ;;  %v3625_v45 = vmax.f32 %v3603_v44, 0.0 }
 0xea4   :  { %v3626_v5 = vmax.f32 %v3606_v37, 0.0 }
 0xea6   :  { %v3631_v46 = vpack.c.bf16 %v3626_v5, %v3625_v45 }
 0xea7   :  { %v3610_v21 = vpop.f32.mrb[152].mxu1 }
 0xea8   :  { %v3611_v36 = vadd.f32 %v3855_v49, %v3610_v21  ;;  %v4430_v6 = vpop.f32.mrb[153].mxu1  ;;  %4445 = vmatmul.mubr.msk.bf16.vlgmr.msra.gmra.mrb[144].mxu0 %vm3673_vm6, %v3631_v46 }
 0xea9   :  { %v3613_v29 = vpop.f32.mrb[154].mxu1  ;;  %4448 = vmatprep.mubr.msk.bf16.mxu0 %vm4798_vm0, %v4797_v0 }
 0xeaa   :  { %v3614_v48 = vadd.f32 %v3855_v49, %v3613_v29  ;;  %v4431_v51 = vpop.f32.mrb[155].mxu1  ;;  %v3627_v53 = vmax.f32 %v3611_v36, 0.0 }
 0xeac   :  { %v3628_v2 = vmax.f32 %v3614_v48, 0.0 }
 0xeae   :  { %v3632_v32 = vpack.c.bf16 %v3628_v2, %v3627_v53 }
 0xeaf   :  { %v3618_v54 = vpop.f32.mrb[156].mxu1 }
 0xeb0   :  { %v3619_v22 = vadd.f32 %v3855_v49, %v3618_v54  ;;  %v4434_v55 = vpop.f32.mrb[157].mxu1  ;;  %4449 = vmatmul.mubr.msk.bf16.gmra.mrb[148].mxu0 %vm3673_vm6, %v3632_v32 }
 0xeb1   :  { %v3621_v57 = vpop.f32.mrb[158].mxu1  ;;  %4452 = vmatprep.mubr.msk.bf16.mxu0 %vm4798_vm0, %v4797_v0 }
 0xeb2   :  { %v3622_v40 = vadd.f32 %v3855_v49, %v3621_v57  ;;  %v4435_v4 = vpop.f32.mrb[159].mxu1  ;;  %v3629_v30 = vmax.f32 %v3619_v22, 0.0 }
 0xeb4   :  { %v3630_v9 = vmax.f32 %v3622_v40, 0.0 }
 0xeb6   :  { %v3633_v15 = vpack.c.bf16 %v3630_v9, %v3629_v30 }
 0xeb8   :  { %4453 = vmatmul.mubr.msk.bf16.gmra.mrb[152].mxu0 %vm3673_vm6, %v3633_v15 }
 0xf7b   :  { %v3717_v61 = vpop.f32.mrb[144].mxu0 }
 0xf7c   :  { %v3718_v63 = vadd.f32 %v3861_v50, %v3717_v61  ;;  %v4446_v3 = vpop.f32.mrb[145].mxu0 }
 0xf7d   :  { %v3720_v35 = vpop.f32.mrb[146].mxu0 }
 0xf7e   :  { %v3740_v7 = vadd.f32 %v3718_v63, %v5724_v39  ;;  %v3721_v19 = vadd.f32 %v3861_v50, %v3720_v35  ;;  %v4447_v62 = vpop.f32.mrb[147].mxu0 }
 0xf80   :  { %3746 = vst.msk [vmem:[#allocation14] sm:$0xff] %vm225_vm1, %v3740_v7  ;;  %v3741_v0 = vadd.f32 %v3721_v19, %v5729_v43 }
 0xf82   :  { %3747 = vst.msk [vmem:[#allocation14 + $0x8] sm:$0xff] %vm225_vm1, %v3741_v0 }
 0xf83   :  { %v3725_v58 = vpop.f32.mrb[148].mxu0 }
 0xf84   :  { %v3726_v59 = vadd.f32 %v3861_v50, %v3725_v58  ;;  %v4450_v12 = vpop.f32.mrb[149].mxu0 }
 0xf85   :  { %v3728_v27 = vpop.f32.mrb[150].mxu0 }
 0xf86   :  { %v3742_v13 = vadd.f32 %v3726_v59, %v5741_v14  ;;  %v3729_v42 = vadd.f32 %v3861_v50, %v3728_v27  ;;  %v4451_v1 = vpop.f32.mrb[151].mxu0 }
 0xf88   :  { %3748 = vst.msk [vmem:[#allocation14 + $0x10] sm:$0xff] %vm225_vm1, %v3742_v13  ;;  %v3743_v39 = vadd.f32 %v3729_v42, %v5746_v17 }
 0xf8a   :  { %3749 = vst.msk [vmem:[#allocation14 + $0x18] sm:$0xff] %vm225_vm1, %v3743_v39 }
 0xf8b   :  { %v3733_v56 = vpop.f32.mrb[152].mxu0 }
 0xf8c   :  { %v3734_v23 = vadd.f32 %v3861_v50, %v3733_v56  ;;  %v4454_v24 = vpop.f32.mrb[153].mxu0 }
 0xf8d   :  { %v3736_v43 = vpop.f32.mrb[154].mxu0 }
 0xf8e   :  { %v3744_v18 = vadd.f32 %v3734_v23, %v5758_v38  ;;  %v3737_v20 = vadd.f32 %v3861_v50, %v3736_v43  ;;  %v4455_v26 = vpop.f32.mrb[155].mxu0 }
 0xf90   :  { %3750 = vst.msk [vmem:[#allocation14 + $0x20] sm:$0xff] %vm225_vm1, %v3744_v18  ;;  %v3745_v14 = vadd.f32 %v3737_v20, %v5763_v10 }
 0xf92   :  { %3751 = vst.msk [vmem:[#allocation14 + $0x28] sm:$0xff] %vm225_vm1, %v3745_v14 }
 0xf93   :  { %4765 = shalt.err (!%p4762_p4)
}
 0xf94   :  { %s4766_s2 = scalar_lea.hbm %s5829_s14, 768 }
 0xf95   :  { %p4767_p5 = scmp.ne.s32.totalorder %s5829_s14, %s4766_s2  ;;  %p4770_p6 = scmp.lt.u32.totalorder %s4766_s2, %s5829_s14 }
 0xf97   :  { %p4772_p7 = pnand %p4770_p6, %p4767_p5 }
 0xf99   :  { %4775 = shalt.err (!%p4772_p7)
}
 0xf9a   :  { %3763 = dma.vmem_to_hbm [thread:$0]  %s3758_s7, 768, %s5829_s14, [#allocation4], %s4792_s8, %s4792_s8, %s4793_s15  }
 0xf9b   :  { %4784 = dma.done.wait [#allocation4], 768  }
 0xf9c   :  { %4785 = vsyncadd [#allocation4], 4294966528 }
 0xf9d   :  { %3767 = vsyncpa [#allocation3], 1 }
 0xf9e   :  { %3768 = vsyncpa [#allocation6], 1 }
 0xf9f   :  { %3769 = vsyncpa [#allocation9], 1 }
 0xfa0   :  { %3770 = vsyncpa [#allocation12], 1 }
 0xfa1   :  { %3771 = vsyncpa [#allocation4], 1 }

</bundles_post_ra>
